<compile_context>
chip_gen: v7x
topology: tpu7x:2x2x1
jax: 0.10.0
libtpu: 0.0.40
codegen_flags: <defaults>
</compile_context>

<pallas_src>
import functools

import jax
import jax.numpy as jnp
from jax.experimental import pallas as pl
from jax.experimental.pallas import tpu as pltpu

# Fixed depthwise high-pass kernel (same for every channel), baked in as constants.
HP_KERNEL = ((-1.0, -1.0, -1.0),
             (-1.0,  8.0, -1.0),
             (-1.0, -1.0, -1.0))

# 3x3 tap offsets in kh-major / kw-minor order (matches OIHW weight flattening).
TAPS = tuple((di, dj) for di in (-1, 0, 1) for dj in (-1, 0, 1))


def _hf_att_kernel(x_ref, w_ref, b_ref, o_ref, *, C, H, W, NB):
    """One grid step: NB whole images, H*W flattened into the lane dimension.

    x_ref : (NB, C, H*W)  input images, lane-dense
    w_ref : (C, C*9)      att_conv weights, w[co, ci*9 + kh*3 + kw]  (f32, VMEM)
    b_ref : (C, 1)        att_conv bias (f32, VMEM)
    o_ref : (NB, C, H*W)  output
    """
    L = H * W

    # ---- boundary-validity masks for zero ('SAME') padding, built once ----
    lane = jax.lax.broadcasted_iota(jnp.int32, (1, L), 1)
    col = lane % W
    not_left = col != 0                    # w-1 exists
    not_right = col != (W - 1)             # w+1 exists
    not_top = lane >= W                    # h-1 exists
    not_bottom = lane < (H - 1) * W        # h+1 exists

    def tap_mask(di, dj):
        ms = []
        if di == -1:
            ms.append(not_top)
        elif di == 1:
            ms.append(not_bottom)
        if dj == -1:
            ms.append(not_left)
        elif dj == 1:
            ms.append(not_right)
        if not ms:
            return None
        m = ms[0]
        for extra in ms[1:]:
            m = jnp.logical_and(m, extra)
        # Hoisted broadcast (JAX does not CSE broadcast_in_dim inside loops).
        return jnp.broadcast_to(m, (C, L))

    masks = {t: tap_mask(*t) for t in TAPS}

    def shift2d(a, di, dj):
        # a[:, h*W + w] -> a[:, (h+di)*W + (w+dj)], zero outside the image.
        s = di * W + dj
        if s != 0:
            a = pltpu.roll(a, (-s) % L, axis=1)   # XLU lane rotation
        m = masks[(di, dj)]
        if m is not None:
            a = jnp.where(m, a, 0.0)
        return a

    # Attention-conv weight columns (co along sublanes), hoisted out of the loop.
    wmat = w_ref[...].astype(jnp.float32)                    # (C, C*9)
    wcols = [wmat[:, j:j + 1] for j in range(C * 9)]         # each (C, 1)
    bias = b_ref[...].astype(jnp.float32)                    # (C, 1)

    for n in range(NB):                                      # static unroll, small NB
        xf = x_ref[n].astype(jnp.float32)                    # (C, L)

        # Depthwise 3x3 high-pass with fixed weights, zero padding.
        hp = jnp.zeros((C, L), jnp.float32)
        for (di, dj) in TAPS:
            hp = hp + HP_KERNEL[di + 1][dj + 1] * shift2d(xf, di, dj)

        # 3x3 attention conv: pre[co] = b[co] + sum_ci sum_tap w * hp_shift[ci].
        acc = jnp.zeros((C, L), jnp.float32) + bias
        for k, (di, dj) in enumerate(TAPS):
            sh = shift2d(hp, di, dj)                         # (C, L), reused over ci/co
            for ci in range(C):
                # (C,1) weight column x (1,L) shifted row -> broadcast FMA on (C,L).
                acc = acc + wcols[ci * 9 + k] * sh[ci:ci + 1, :]

        # sigmoid: exp + reciprocal ride the EUP slot; one VALU multiply for the gate.
        e = jnp.exp(-acc)
        att = pl.reciprocal(1.0 + e, approx=False)
        o_ref[n] = (xf * att).astype(o_ref.dtype)


def high_freq_attention_block(x_nchw, att_w, att_b):
    """x_nchw: (N, C, H, W); att_w: (C, C, 3, 3) torch OIHW; att_b: (C,)."""
    N, C, H, W = x_nchw.shape
    L = H * W
    itemsize = jnp.dtype(x_nchw.dtype).itemsize

    # Images per grid step: whole images, enough bytes to amortize the fixed
    # per-step cost, capped to bound unrolled code size and per-step VMEM.
    NB = 1
    for nb in range(1, min(N, 8) + 1):
        if N % nb == 0:
            NB = nb
            if nb * C * L * itemsize >= 256 * 1024:
                break

    x_flat = x_nchw.reshape(N, C, L)                         # free view of NCHW in HBM
    w_flat = att_w.astype(jnp.float32).reshape(C, C * 9)     # w[co, ci*9 + kh*3 + kw]
    b_col = att_b.astype(jnp.float32).reshape(C, 1)

    kernel = functools.partial(_hf_att_kernel, C=C, H=H, W=W, NB=NB)

    block_bytes = NB * C * L * itemsize
    vmem_limit = int(min(96 * 2**20, max(16 * 2**20, 8 * block_bytes)))

    cost = pl.CostEstimate(
        flops=2 * N * C * H * W * 9 * (1 + C),
        transcendentals=N * C * H * W,
        bytes_accessed=2 * N * C * H * W * itemsize,
    )

    # TODO(synk): for large H*W, switch to row-tile halo blocks (lane dim = TH*W)
    # so per-step VMEM stays bounded on v7x's 64 MiB, and expose a second
    # parallel grid axis when N per chip is 1 so both v7x TensorCores get work.
    out_flat = pl.pallas_call(
        kernel,
        out_shape=jax.ShapeDtypeStruct((N, C, L), x_nchw.dtype),
        grid_spec=pltpu.PrefetchScalarGridSpec(
            num_scalar_prefetch=0,
            grid=(N // NB,),
            in_specs=[
                pl.BlockSpec((NB, C, L), lambda i: (i, 0, 0)),
                pl.BlockSpec((C, C * 9), lambda i: (0, 0)),
                pl.BlockSpec((C, 1), lambda i: (0, 0)),
            ],
            out_specs=pl.BlockSpec((NB, C, L), lambda i: (i, 0, 0)),
        ),
        compiler_params=pltpu.CompilerParams(
            dimension_semantics=("parallel",),
            vmem_limit_bytes=vmem_limit,
        ),
        cost_estimate=cost,
    )(x_flat, w_flat, b_col)
    return out_flat.reshape(N, C, H, W)


def reference(x_nchw, att_w, att_b):
    """Pure-JAX reference matching the PyTorch module."""
    C = x_nchw.shape[1]
    hp_k = jnp.array(HP_KERNEL, jnp.float32).reshape(1, 1, 3, 3)
    hp_w = jnp.broadcast_to(hp_k, (C, 1, 3, 3))
    hp = jax.lax.conv_general_dilated(
        x_nchw, hp_w, (1, 1), "SAME",
        dimension_numbers=("NCHW", "OIHW", "NCHW"), feature_group_count=C)
    pre = jax.lax.conv_general_dilated(
        hp, att_w, (1, 1), "SAME",
        dimension_numbers=("NCHW", "OIHW", "NCHW")) + att_b[None, :, None, None]
    return x_nchw * jax.nn.sigmoid(pre)


if __name__ == "__main__":
    N, C, H, W = 2, 4, 16, 16
    key = jax.random.PRNGKey(0)
    kx, kw, kb = jax.random.split(key, 3)
    x = jax.random.normal(kx, (N, C, H, W), dtype=jnp.float32)
    att_w = jax.random.normal(kw, (C, C, 3, 3), dtype=jnp.float32) * 0.1
    att_b = jax.random.normal(kb, (C,), dtype=jnp.float32) * 0.1

    out = high_freq_attention_block(x, att_w, att_b)
    out = jax.block_until_ready(out)

    ref = reference(x, att_w, att_b)
    assert out.shape == (N, C, H, W)
    assert jnp.allclose(out, ref, atol=1e-4, rtol=1e-4), "mismatch vs reference"
    print("KERNEL_OK")
</pallas_src>

<mosaic_0001>
module attributes {stable_mosaic.version = 11 : i64} {
  func.func @_hf_att_kernel(%arg0: i32, %arg1: memref<2x4x256xf32, #tpu.memory_space<vmem>>, %arg2: memref<4x36xf32, #tpu.memory_space<vmem>>, %arg3: memref<4x1xf32, #tpu.memory_space<vmem>>, %arg4: memref<2x4x256xf32, #tpu.memory_space<vmem>>) attributes {dimension_semantics = [#tpu.dimension_semantics<parallel>], iteration_bounds = array<i64: 1>, scalar_prefetch = 0 : i64, scratch_operands = 0 : i64, tpu.core_type = #tpu.core_type<tc>, window_params = [{transform_indices = @transform_0, window_bounds = array<i64: 2, 4, 256>}, {pipeline_mode = #tpu.pipeline_mode<synchronous>, transform_indices = @transform_1, window_bounds = array<i64: 4, 36>}, {pipeline_mode = #tpu.pipeline_mode<synchronous>, transform_indices = @transform_2, window_bounds = array<i64: 4, 1>}, {transform_indices = @transform_3, window_bounds = array<i64: 2, 4, 256>}]} {
    %0 = tpu.iota {dimensions = array<i32: 1>} : vector<1x256xi32>
    %c16_i32 = arith.constant 16 : i32
    %c0_i32 = arith.constant 0 : i32
    %1 = arith.cmpi eq, %c16_i32, %c0_i32 : i32
    %c1_i32 = arith.constant 1 : i32
    %2 = arith.select %1, %c1_i32, %c16_i32 : i32
    %3 = vector.broadcast %2 : i32 to vector<1x256xi32>
    %4 = arith.remsi %0, %3 : vector<1x256xi32>
    %c0_i32_0 = arith.constant 0 : i32
    %5 = vector.broadcast %c0_i32_0 : i32 to vector<1x256xi32>
    %6 = arith.cmpi ne, %4, %5 : vector<1x256xi32>
    %c0_i32_1 = arith.constant 0 : i32
    %7 = vector.broadcast %c0_i32_1 : i32 to vector<1x256xi32>
    %8 = arith.cmpi slt, %4, %7 : vector<1x256xi32>
    %c0_i32_2 = arith.constant 0 : i32
    %9 = arith.cmpi slt, %2, %c0_i32_2 : i32
    %10 = vector.broadcast %9 : i1 to vector<1x256xi1>
    %11 = vector.broadcast %10 : vector<1x256xi1> to vector<1x256xi1>
    %12 = arith.xori %8, %11 : vector<1x256xi1>
    %13 = arith.andi %12, %6 : vector<1x256xi1>
    %14 = vector.broadcast %2 : i32 to vector<1x256xi32>
    %15 = arith.addi %4, %14 : vector<1x256xi32>
    %16 = arith.select %13, %15, %4 : vector<1x256xi1>, vector<1x256xi32>
    %c0_i32_3 = arith.constant 0 : i32
    %17 = vector.broadcast %c0_i32_3 : i32 to vector<1x256xi32>
    %18 = arith.cmpi ne, %16, %17 : vector<1x256xi32>
    %c15_i32 = arith.constant 15 : i32
    %19 = vector.broadcast %c15_i32 : i32 to vector<1x256xi32>
    %20 = arith.cmpi ne, %16, %19 : vector<1x256xi32>
    %c16_i32_4 = arith.constant 16 : i32
    %21 = vector.broadcast %c16_i32_4 : i32 to vector<1x256xi32>
    %22 = arith.cmpi sge, %0, %21 : vector<1x256xi32>
    %c240_i32 = arith.constant 240 : i32
    %23 = vector.broadcast %c240_i32 : i32 to vector<1x256xi32>
    %24 = arith.cmpi slt, %0, %23 : vector<1x256xi32>
    %25 = arith.andi %22, %18 : vector<1x256xi1>
    %26 = vector.shape_cast %25 : vector<1x256xi1> to vector<1x256xi1>
    %27 = vector.broadcast %26 : vector<1x256xi1> to vector<4x256xi1>
    %28 = vector.shape_cast %22 : vector<1x256xi1> to vector<1x256xi1>
    %29 = vector.broadcast %28 : vector<1x256xi1> to vector<4x256xi1>
    %30 = arith.andi %22, %20 : vector<1x256xi1>
    %31 = vector.shape_cast %30 : vector<1x256xi1> to vector<1x256xi1>
    %32 = vector.broadcast %31 : vector<1x256xi1> to vector<4x256xi1>
    %33 = vector.shape_cast %18 : vector<1x256xi1> to vector<1x256xi1>
    %34 = vector.broadcast %33 : vector<1x256xi1> to vector<4x256xi1>
    %35 = vector.shape_cast %20 : vector<1x256xi1> to vector<1x256xi1>
    %36 = vector.broadcast %35 : vector<1x256xi1> to vector<4x256xi1>
    %37 = arith.andi %24, %18 : vector<1x256xi1>
    %38 = vector.shape_cast %37 : vector<1x256xi1> to vector<1x256xi1>
    %39 = vector.broadcast %38 : vector<1x256xi1> to vector<4x256xi1>
    %40 = vector.shape_cast %24 : vector<1x256xi1> to vector<1x256xi1>
    %41 = vector.broadcast %40 : vector<1x256xi1> to vector<4x256xi1>
    %42 = arith.andi %24, %20 : vector<1x256xi1>
    %43 = vector.shape_cast %42 : vector<1x256xi1> to vector<1x256xi1>
    %44 = vector.broadcast %43 : vector<1x256xi1> to vector<4x256xi1>
    %c0 = arith.constant 0 : index
    %c0_5 = arith.constant 0 : index
    %45 = vector.load %arg2[%c0, %c0_5] : memref<4x36xf32, #tpu.memory_space<vmem>>, vector<4x36xf32>
    %46 = vector.extract_strided_slice %45 {offsets = [0, 0], sizes = [4, 1], strides = [1, 1]} : vector<4x36xf32> to vector<4x1xf32>
    %47 = vector.extract_strided_slice %45 {offsets = [0, 1], sizes = [4, 1], strides = [1, 1]} : vector<4x36xf32> to vector<4x1xf32>
    %48 = vector.extract_strided_slice %45 {offsets = [0, 2], sizes = [4, 1], strides = [1, 1]} : vector<4x36xf32> to vector<4x1xf32>
    %49 = vector.extract_strided_slice %45 {offsets = [0, 3], sizes = [4, 1], strides = [1, 1]} : vector<4x36xf32> to vector<4x1xf32>
    %50 = vector.extract_strided_slice %45 {offsets = [0, 4], sizes = [4, 1], strides = [1, 1]} : vector<4x36xf32> to vector<4x1xf32>
    %51 = vector.extract_strided_slice %45 {offsets = [0, 5], sizes = [4, 1], strides = [1, 1]} : vector<4x36xf32> to vector<4x1xf32>
    %52 = vector.extract_strided_slice %45 {offsets = [0, 6], sizes = [4, 1], strides = [1, 1]} : vector<4x36xf32> to vector<4x1xf32>
    %53 = vector.extract_strided_slice %45 {offsets = [0, 7], sizes = [4, 1], strides = [1, 1]} : vector<4x36xf32> to vector<4x1xf32>
    %54 = vector.extract_strided_slice %45 {offsets = [0, 8], sizes = [4, 1], strides = [1, 1]} : vector<4x36xf32> to vector<4x1xf32>
    %55 = vector.extract_strided_slice %45 {offsets = [0, 9], sizes = [4, 1], strides = [1, 1]} : vector<4x36xf32> to vector<4x1xf32>
    %56 = vector.extract_strided_slice %45 {offsets = [0, 10], sizes = [4, 1], strides = [1, 1]} : vector<4x36xf32> to vector<4x1xf32>
    %57 = vector.extract_strided_slice %45 {offsets = [0, 11], sizes = [4, 1], strides = [1, 1]} : vector<4x36xf32> to vector<4x1xf32>
    %58 = vector.extract_strided_slice %45 {offsets = [0, 12], sizes = [4, 1], strides = [1, 1]} : vector<4x36xf32> to vector<4x1xf32>
    %59 = vector.extract_strided_slice %45 {offsets = [0, 13], sizes = [4, 1], strides = [1, 1]} : vector<4x36xf32> to vector<4x1xf32>
    %60 = vector.extract_strided_slice %45 {offsets = [0, 14], sizes = [4, 1], strides = [1, 1]} : vector<4x36xf32> to vector<4x1xf32>
    %61 = vector.extract_strided_slice %45 {offsets = [0, 15], sizes = [4, 1], strides = [1, 1]} : vector<4x36xf32> to vector<4x1xf32>
    %62 = vector.extract_strided_slice %45 {offsets = [0, 16], sizes = [4, 1], strides = [1, 1]} : vector<4x36xf32> to vector<4x1xf32>
    %63 = vector.extract_strided_slice %45 {offsets = [0, 17], sizes = [4, 1], strides = [1, 1]} : vector<4x36xf32> to vector<4x1xf32>
    %64 = vector.extract_strided_slice %45 {offsets = [0, 18], sizes = [4, 1], strides = [1, 1]} : vector<4x36xf32> to vector<4x1xf32>
    %65 = vector.extract_strided_slice %45 {offsets = [0, 19], sizes = [4, 1], strides = [1, 1]} : vector<4x36xf32> to vector<4x1xf32>
    %66 = vector.extract_strided_slice %45 {offsets = [0, 20], sizes = [4, 1], strides = [1, 1]} : vector<4x36xf32> to vector<4x1xf32>
    %67 = vector.extract_strided_slice %45 {offsets = [0, 21], sizes = [4, 1], strides = [1, 1]} : vector<4x36xf32> to vector<4x1xf32>
    %68 = vector.extract_strided_slice %45 {offsets = [0, 22], sizes = [4, 1], strides = [1, 1]} : vector<4x36xf32> to vector<4x1xf32>
    %69 = vector.extract_strided_slice %45 {offsets = [0, 23], sizes = [4, 1], strides = [1, 1]} : vector<4x36xf32> to vector<4x1xf32>
    %70 = vector.extract_strided_slice %45 {offsets = [0, 24], sizes = [4, 1], strides = [1, 1]} : vector<4x36xf32> to vector<4x1xf32>
    %71 = vector.extract_strided_slice %45 {offsets = [0, 25], sizes = [4, 1], strides = [1, 1]} : vector<4x36xf32> to vector<4x1xf32>
    %72 = vector.extract_strided_slice %45 {offsets = [0, 26], sizes = [4, 1], strides = [1, 1]} : vector<4x36xf32> to vector<4x1xf32>
    %73 = vector.extract_strided_slice %45 {offsets = [0, 27], sizes = [4, 1], strides = [1, 1]} : vector<4x36xf32> to vector<4x1xf32>
    %74 = vector.extract_strided_slice %45 {offsets = [0, 28], sizes = [4, 1], strides = [1, 1]} : vector<4x36xf32> to vector<4x1xf32>
    %75 = vector.extract_strided_slice %45 {offsets = [0, 29], sizes = [4, 1], strides = [1, 1]} : vector<4x36xf32> to vector<4x1xf32>
    %76 = vector.extract_strided_slice %45 {offsets = [0, 30], sizes = [4, 1], strides = [1, 1]} : vector<4x36xf32> to vector<4x1xf32>
    %77 = vector.extract_strided_slice %45 {offsets = [0, 31], sizes = [4, 1], strides = [1, 1]} : vector<4x36xf32> to vector<4x1xf32>
    %78 = vector.extract_strided_slice %45 {offsets = [0, 32], sizes = [4, 1], strides = [1, 1]} : vector<4x36xf32> to vector<4x1xf32>
    %79 = vector.extract_strided_slice %45 {offsets = [0, 33], sizes = [4, 1], strides = [1, 1]} : vector<4x36xf32> to vector<4x1xf32>
    %80 = vector.extract_strided_slice %45 {offsets = [0, 34], sizes = [4, 1], strides = [1, 1]} : vector<4x36xf32> to vector<4x1xf32>
    %81 = vector.extract_strided_slice %45 {offsets = [0, 35], sizes = [4, 1], strides = [1, 1]} : vector<4x36xf32> to vector<4x1xf32>
    %c0_6 = arith.constant 0 : index
    %c0_7 = arith.constant 0 : index
    %82 = vector.load %arg3[%c0_6, %c0_7] : memref<4x1xf32, #tpu.memory_space<vmem>>, vector<4x1xf32>
    %c0_8 = arith.constant 0 : index
    %c0_9 = arith.constant 0 : index
    %c0_10 = arith.constant 0 : index
    %83 = vector.load %arg1[%c0_8, %c0_9, %c0_10] : memref<2x4x256xf32, #tpu.memory_space<vmem>>, vector<1x4x256xf32>
    %84 = vector.shape_cast %83 : vector<1x4x256xf32> to vector<4x256xf32>
    %cst = arith.constant 0.000000e+00 : f32
    %85 = vector.broadcast %cst : f32 to vector<4x256xf32>
    %c17_i32 = arith.constant 17 : i32
    %86 = tpu.dynamic_rotate %84 by %c17_i32 dim 1 : vector<4x256xf32>, i32 -> vector<4x256xf32>
    %cst_11 = arith.constant 0.000000e+00 : f32
    %87 = vector.broadcast %cst_11 : f32 to vector<4x256xf32>
    %88 = arith.select %27, %86, %87 : vector<4x256xi1>, vector<4x256xf32>
    %cst_12 = arith.constant -1.000000e+00 : f32
    %89 = vector.broadcast %cst_12 : f32 to vector<4x256xf32>
    %90 = arith.mulf %89, %88 : vector<4x256xf32>
    %91 = arith.addf %85, %90 : vector<4x256xf32>
    %c16_i32_13 = arith.constant 16 : i32
    %92 = tpu.dynamic_rotate %84 by %c16_i32_13 dim 1 : vector<4x256xf32>, i32 -> vector<4x256xf32>
    %cst_14 = arith.constant 0.000000e+00 : f32
    %93 = vector.broadcast %cst_14 : f32 to vector<4x256xf32>
    %94 = arith.select %29, %92, %93 : vector<4x256xi1>, vector<4x256xf32>
    %cst_15 = arith.constant -1.000000e+00 : f32
    %95 = vector.broadcast %cst_15 : f32 to vector<4x256xf32>
    %96 = arith.mulf %95, %94 : vector<4x256xf32>
    %97 = arith.addf %91, %96 : vector<4x256xf32>
    %c15_i32_16 = arith.constant 15 : i32
    %98 = tpu.dynamic_rotate %84 by %c15_i32_16 dim 1 : vector<4x256xf32>, i32 -> vector<4x256xf32>
    %cst_17 = arith.constant 0.000000e+00 : f32
    %99 = vector.broadcast %cst_17 : f32 to vector<4x256xf32>
    %100 = arith.select %32, %98, %99 : vector<4x256xi1>, vector<4x256xf32>
    %cst_18 = arith.constant -1.000000e+00 : f32
    %101 = vector.broadcast %cst_18 : f32 to vector<4x256xf32>
    %102 = arith.mulf %101, %100 : vector<4x256xf32>
    %103 = arith.addf %97, %102 : vector<4x256xf32>
    %c1_i32_19 = arith.constant 1 : i32
    %104 = tpu.dynamic_rotate %84 by %c1_i32_19 dim 1 : vector<4x256xf32>, i32 -> vector<4x256xf32>
    %cst_20 = arith.constant 0.000000e+00 : f32
    %105 = vector.broadcast %cst_20 : f32 to vector<4x256xf32>
    %106 = arith.select %34, %104, %105 : vector<4x256xi1>, vector<4x256xf32>
    %cst_21 = arith.constant -1.000000e+00 : f32
    %107 = vector.broadcast %cst_21 : f32 to vector<4x256xf32>
    %108 = arith.mulf %107, %106 : vector<4x256xf32>
    %109 = arith.addf %103, %108 : vector<4x256xf32>
    %cst_22 = arith.constant 8.000000e+00 : f32
    %110 = vector.broadcast %cst_22 : f32 to vector<4x256xf32>
    %111 = arith.mulf %110, %84 : vector<4x256xf32>
    %112 = arith.addf %109, %111 : vector<4x256xf32>
    %c255_i32 = arith.constant 255 : i32
    %113 = tpu.dynamic_rotate %84 by %c255_i32 dim 1 : vector<4x256xf32>, i32 -> vector<4x256xf32>
    %cst_23 = arith.constant 0.000000e+00 : f32
    %114 = vector.broadcast %cst_23 : f32 to vector<4x256xf32>
    %115 = arith.select %36, %113, %114 : vector<4x256xi1>, vector<4x256xf32>
    %cst_24 = arith.constant -1.000000e+00 : f32
    %116 = vector.broadcast %cst_24 : f32 to vector<4x256xf32>
    %117 = arith.mulf %116, %115 : vector<4x256xf32>
    %118 = arith.addf %112, %117 : vector<4x256xf32>
    %c241_i32 = arith.constant 241 : i32
    %119 = tpu.dynamic_rotate %84 by %c241_i32 dim 1 : vector<4x256xf32>, i32 -> vector<4x256xf32>
    %cst_25 = arith.constant 0.000000e+00 : f32
    %120 = vector.broadcast %cst_25 : f32 to vector<4x256xf32>
    %121 = arith.select %39, %119, %120 : vector<4x256xi1>, vector<4x256xf32>
    %cst_26 = arith.constant -1.000000e+00 : f32
    %122 = vector.broadcast %cst_26 : f32 to vector<4x256xf32>
    %123 = arith.mulf %122, %121 : vector<4x256xf32>
    %124 = arith.addf %118, %123 : vector<4x256xf32>
    %c240_i32_27 = arith.constant 240 : i32
    %125 = tpu.dynamic_rotate %84 by %c240_i32_27 dim 1 : vector<4x256xf32>, i32 -> vector<4x256xf32>
    %cst_28 = arith.constant 0.000000e+00 : f32
    %126 = vector.broadcast %cst_28 : f32 to vector<4x256xf32>
    %127 = arith.select %41, %125, %126 : vector<4x256xi1>, vector<4x256xf32>
    %cst_29 = arith.constant -1.000000e+00 : f32
    %128 = vector.broadcast %cst_29 : f32 to vector<4x256xf32>
    %129 = arith.mulf %128, %127 : vector<4x256xf32>
    %130 = arith.addf %124, %129 : vector<4x256xf32>
    %c239_i32 = arith.constant 239 : i32
    %131 = tpu.dynamic_rotate %84 by %c239_i32 dim 1 : vector<4x256xf32>, i32 -> vector<4x256xf32>
    %cst_30 = arith.constant 0.000000e+00 : f32
    %132 = vector.broadcast %cst_30 : f32 to vector<4x256xf32>
    %133 = arith.select %44, %131, %132 : vector<4x256xi1>, vector<4x256xf32>
    %cst_31 = arith.constant -1.000000e+00 : f32
    %134 = vector.broadcast %cst_31 : f32 to vector<4x256xf32>
    %135 = arith.mulf %134, %133 : vector<4x256xf32>
    %136 = arith.addf %130, %135 : vector<4x256xf32>
    %cst_32 = arith.constant 0.000000e+00 : f32
    %137 = vector.broadcast %cst_32 : f32 to vector<4x256xf32>
    %138 = vector.broadcast %82 : vector<4x1xf32> to vector<4x256xf32>
    %139 = arith.addf %137, %138 : vector<4x256xf32>
    %c17_i32_33 = arith.constant 17 : i32
    %140 = tpu.dynamic_rotate %136 by %c17_i32_33 dim 1 : vector<4x256xf32>, i32 -> vector<4x256xf32>
    %cst_34 = arith.constant 0.000000e+00 : f32
    %141 = vector.broadcast %cst_34 : f32 to vector<4x256xf32>
    %142 = arith.select %27, %140, %141 : vector<4x256xi1>, vector<4x256xf32>
    %143 = vector.extract_strided_slice %142 {offsets = [0, 0], sizes = [1, 256], strides = [1, 1]} : vector<4x256xf32> to vector<1x256xf32>
    %144 = vector.broadcast %46 : vector<4x1xf32> to vector<4x256xf32>
    %145 = vector.broadcast %143 : vector<1x256xf32> to vector<4x256xf32>
    %146 = arith.mulf %144, %145 : vector<4x256xf32>
    %147 = arith.addf %139, %146 : vector<4x256xf32>
    %148 = vector.extract_strided_slice %142 {offsets = [1, 0], sizes = [1, 256], strides = [1, 1]} : vector<4x256xf32> to vector<1x256xf32>
    %149 = vector.broadcast %55 : vector<4x1xf32> to vector<4x256xf32>
    %150 = vector.broadcast %148 : vector<1x256xf32> to vector<4x256xf32>
    %151 = arith.mulf %149, %150 : vector<4x256xf32>
    %152 = arith.addf %147, %151 : vector<4x256xf32>
    %153 = vector.extract_strided_slice %142 {offsets = [2, 0], sizes = [1, 256], strides = [1, 1]} : vector<4x256xf32> to vector<1x256xf32>
    %154 = vector.broadcast %64 : vector<4x1xf32> to vector<4x256xf32>
    %155 = vector.broadcast %153 : vector<1x256xf32> to vector<4x256xf32>
    %156 = arith.mulf %154, %155 : vector<4x256xf32>
    %157 = arith.addf %152, %156 : vector<4x256xf32>
    %158 = vector.extract_strided_slice %142 {offsets = [3, 0], sizes = [1, 256], strides = [1, 1]} : vector<4x256xf32> to vector<1x256xf32>
    %159 = vector.broadcast %73 : vector<4x1xf32> to vector<4x256xf32>
    %160 = vector.broadcast %158 : vector<1x256xf32> to vector<4x256xf32>
    %161 = arith.mulf %159, %160 : vector<4x256xf32>
    %162 = arith.addf %157, %161 : vector<4x256xf32>
    %c16_i32_35 = arith.constant 16 : i32
    %163 = tpu.dynamic_rotate %136 by %c16_i32_35 dim 1 : vector<4x256xf32>, i32 -> vector<4x256xf32>
    %cst_36 = arith.constant 0.000000e+00 : f32
    %164 = vector.broadcast %cst_36 : f32 to vector<4x256xf32>
    %165 = arith.select %29, %163, %164 : vector<4x256xi1>, vector<4x256xf32>
    %166 = vector.extract_strided_slice %165 {offsets = [0, 0], sizes = [1, 256], strides = [1, 1]} : vector<4x256xf32> to vector<1x256xf32>
    %167 = vector.broadcast %47 : vector<4x1xf32> to vector<4x256xf32>
    %168 = vector.broadcast %166 : vector<1x256xf32> to vector<4x256xf32>
    %169 = arith.mulf %167, %168 : vector<4x256xf32>
    %170 = arith.addf %162, %169 : vector<4x256xf32>
    %171 = vector.extract_strided_slice %165 {offsets = [1, 0], sizes = [1, 256], strides = [1, 1]} : vector<4x256xf32> to vector<1x256xf32>
    %172 = vector.broadcast %56 : vector<4x1xf32> to vector<4x256xf32>
    %173 = vector.broadcast %171 : vector<1x256xf32> to vector<4x256xf32>
    %174 = arith.mulf %172, %173 : vector<4x256xf32>
    %175 = arith.addf %170, %174 : vector<4x256xf32>
    %176 = vector.extract_strided_slice %165 {offsets = [2, 0], sizes = [1, 256], strides = [1, 1]} : vector<4x256xf32> to vector<1x256xf32>
    %177 = vector.broadcast %65 : vector<4x1xf32> to vector<4x256xf32>
    %178 = vector.broadcast %176 : vector<1x256xf32> to vector<4x256xf32>
    %179 = arith.mulf %177, %178 : vector<4x256xf32>
    %180 = arith.addf %175, %179 : vector<4x256xf32>
    %181 = vector.extract_strided_slice %165 {offsets = [3, 0], sizes = [1, 256], strides = [1, 1]} : vector<4x256xf32> to vector<1x256xf32>
    %182 = vector.broadcast %74 : vector<4x1xf32> to vector<4x256xf32>
    %183 = vector.broadcast %181 : vector<1x256xf32> to vector<4x256xf32>
    %184 = arith.mulf %182, %183 : vector<4x256xf32>
    %185 = arith.addf %180, %184 : vector<4x256xf32>
    %c15_i32_37 = arith.constant 15 : i32
    %186 = tpu.dynamic_rotate %136 by %c15_i32_37 dim 1 : vector<4x256xf32>, i32 -> vector<4x256xf32>
    %cst_38 = arith.constant 0.000000e+00 : f32
    %187 = vector.broadcast %cst_38 : f32 to vector<4x256xf32>
    %188 = arith.select %32, %186, %187 : vector<4x256xi1>, vector<4x256xf32>
    %189 = vector.extract_strided_slice %188 {offsets = [0, 0], sizes = [1, 256], strides = [1, 1]} : vector<4x256xf32> to vector<1x256xf32>
    %190 = vector.broadcast %48 : vector<4x1xf32> to vector<4x256xf32>
    %191 = vector.broadcast %189 : vector<1x256xf32> to vector<4x256xf32>
    %192 = arith.mulf %190, %191 : vector<4x256xf32>
    %193 = arith.addf %185, %192 : vector<4x256xf32>
    %194 = vector.extract_strided_slice %188 {offsets = [1, 0], sizes = [1, 256], strides = [1, 1]} : vector<4x256xf32> to vector<1x256xf32>
    %195 = vector.broadcast %57 : vector<4x1xf32> to vector<4x256xf32>
    %196 = vector.broadcast %194 : vector<1x256xf32> to vector<4x256xf32>
    %197 = arith.mulf %195, %196 : vector<4x256xf32>
    %198 = arith.addf %193, %197 : vector<4x256xf32>
    %199 = vector.extract_strided_slice %188 {offsets = [2, 0], sizes = [1, 256], strides = [1, 1]} : vector<4x256xf32> to vector<1x256xf32>
    %200 = vector.broadcast %66 : vector<4x1xf32> to vector<4x256xf32>
    %201 = vector.broadcast %199 : vector<1x256xf32> to vector<4x256xf32>
    %202 = arith.mulf %200, %201 : vector<4x256xf32>
    %203 = arith.addf %198, %202 : vector<4x256xf32>
    %204 = vector.extract_strided_slice %188 {offsets = [3, 0], sizes = [1, 256], strides = [1, 1]} : vector<4x256xf32> to vector<1x256xf32>
    %205 = vector.broadcast %75 : vector<4x1xf32> to vector<4x256xf32>
    %206 = vector.broadcast %204 : vector<1x256xf32> to vector<4x256xf32>
    %207 = arith.mulf %205, %206 : vector<4x256xf32>
    %208 = arith.addf %203, %207 : vector<4x256xf32>
    %c1_i32_39 = arith.constant 1 : i32
    %209 = tpu.dynamic_rotate %136 by %c1_i32_39 dim 1 : vector<4x256xf32>, i32 -> vector<4x256xf32>
    %cst_40 = arith.constant 0.000000e+00 : f32
    %210 = vector.broadcast %cst_40 : f32 to vector<4x256xf32>
    %211 = arith.select %34, %209, %210 : vector<4x256xi1>, vector<4x256xf32>
    %212 = vector.extract_strided_slice %211 {offsets = [0, 0], sizes = [1, 256], strides = [1, 1]} : vector<4x256xf32> to vector<1x256xf32>
    %213 = vector.broadcast %49 : vector<4x1xf32> to vector<4x256xf32>
    %214 = vector.broadcast %212 : vector<1x256xf32> to vector<4x256xf32>
    %215 = arith.mulf %213, %214 : vector<4x256xf32>
    %216 = arith.addf %208, %215 : vector<4x256xf32>
    %217 = vector.extract_strided_slice %211 {offsets = [1, 0], sizes = [1, 256], strides = [1, 1]} : vector<4x256xf32> to vector<1x256xf32>
    %218 = vector.broadcast %58 : vector<4x1xf32> to vector<4x256xf32>
    %219 = vector.broadcast %217 : vector<1x256xf32> to vector<4x256xf32>
    %220 = arith.mulf %218, %219 : vector<4x256xf32>
    %221 = arith.addf %216, %220 : vector<4x256xf32>
    %222 = vector.extract_strided_slice %211 {offsets = [2, 0], sizes = [1, 256], strides = [1, 1]} : vector<4x256xf32> to vector<1x256xf32>
    %223 = vector.broadcast %67 : vector<4x1xf32> to vector<4x256xf32>
    %224 = vector.broadcast %222 : vector<1x256xf32> to vector<4x256xf32>
    %225 = arith.mulf %223, %224 : vector<4x256xf32>
    %226 = arith.addf %221, %225 : vector<4x256xf32>
    %227 = vector.extract_strided_slice %211 {offsets = [3, 0], sizes = [1, 256], strides = [1, 1]} : vector<4x256xf32> to vector<1x256xf32>
    %228 = vector.broadcast %76 : vector<4x1xf32> to vector<4x256xf32>
    %229 = vector.broadcast %227 : vector<1x256xf32> to vector<4x256xf32>
    %230 = arith.mulf %228, %229 : vector<4x256xf32>
    %231 = arith.addf %226, %230 : vector<4x256xf32>
    %232 = vector.extract_strided_slice %136 {offsets = [0, 0], sizes = [1, 256], strides = [1, 1]} : vector<4x256xf32> to vector<1x256xf32>
    %233 = vector.broadcast %50 : vector<4x1xf32> to vector<4x256xf32>
    %234 = vector.broadcast %232 : vector<1x256xf32> to vector<4x256xf32>
    %235 = arith.mulf %233, %234 : vector<4x256xf32>
    %236 = arith.addf %231, %235 : vector<4x256xf32>
    %237 = vector.extract_strided_slice %136 {offsets = [1, 0], sizes = [1, 256], strides = [1, 1]} : vector<4x256xf32> to vector<1x256xf32>
    %238 = vector.broadcast %59 : vector<4x1xf32> to vector<4x256xf32>
    %239 = vector.broadcast %237 : vector<1x256xf32> to vector<4x256xf32>
    %240 = arith.mulf %238, %239 : vector<4x256xf32>
    %241 = arith.addf %236, %240 : vector<4x256xf32>
    %242 = vector.extract_strided_slice %136 {offsets = [2, 0], sizes = [1, 256], strides = [1, 1]} : vector<4x256xf32> to vector<1x256xf32>
    %243 = vector.broadcast %68 : vector<4x1xf32> to vector<4x256xf32>
    %244 = vector.broadcast %242 : vector<1x256xf32> to vector<4x256xf32>
    %245 = arith.mulf %243, %244 : vector<4x256xf32>
    %246 = arith.addf %241, %245 : vector<4x256xf32>
    %247 = vector.extract_strided_slice %136 {offsets = [3, 0], sizes = [1, 256], strides = [1, 1]} : vector<4x256xf32> to vector<1x256xf32>
    %248 = vector.broadcast %77 : vector<4x1xf32> to vector<4x256xf32>
    %249 = vector.broadcast %247 : vector<1x256xf32> to vector<4x256xf32>
    %250 = arith.mulf %248, %249 : vector<4x256xf32>
    %251 = arith.addf %246, %250 : vector<4x256xf32>
    %c255_i32_41 = arith.constant 255 : i32
    %252 = tpu.dynamic_rotate %136 by %c255_i32_41 dim 1 : vector<4x256xf32>, i32 -> vector<4x256xf32>
    %cst_42 = arith.constant 0.000000e+00 : f32
    %253 = vector.broadcast %cst_42 : f32 to vector<4x256xf32>
    %254 = arith.select %36, %252, %253 : vector<4x256xi1>, vector<4x256xf32>
    %255 = vector.extract_strided_slice %254 {offsets = [0, 0], sizes = [1, 256], strides = [1, 1]} : vector<4x256xf32> to vector<1x256xf32>
    %256 = vector.broadcast %51 : vector<4x1xf32> to vector<4x256xf32>
    %257 = vector.broadcast %255 : vector<1x256xf32> to vector<4x256xf32>
    %258 = arith.mulf %256, %257 : vector<4x256xf32>
    %259 = arith.addf %251, %258 : vector<4x256xf32>
    %260 = vector.extract_strided_slice %254 {offsets = [1, 0], sizes = [1, 256], strides = [1, 1]} : vector<4x256xf32> to vector<1x256xf32>
    %261 = vector.broadcast %60 : vector<4x1xf32> to vector<4x256xf32>
    %262 = vector.broadcast %260 : vector<1x256xf32> to vector<4x256xf32>
    %263 = arith.mulf %261, %262 : vector<4x256xf32>
    %264 = arith.addf %259, %263 : vector<4x256xf32>
    %265 = vector.extract_strided_slice %254 {offsets = [2, 0], sizes = [1, 256], strides = [1, 1]} : vector<4x256xf32> to vector<1x256xf32>
    %266 = vector.broadcast %69 : vector<4x1xf32> to vector<4x256xf32>
    %267 = vector.broadcast %265 : vector<1x256xf32> to vector<4x256xf32>
    %268 = arith.mulf %266, %267 : vector<4x256xf32>
    %269 = arith.addf %264, %268 : vector<4x256xf32>
    %270 = vector.extract_strided_slice %254 {offsets = [3, 0], sizes = [1, 256], strides = [1, 1]} : vector<4x256xf32> to vector<1x256xf32>
    %271 = vector.broadcast %78 : vector<4x1xf32> to vector<4x256xf32>
    %272 = vector.broadcast %270 : vector<1x256xf32> to vector<4x256xf32>
    %273 = arith.mulf %271, %272 : vector<4x256xf32>
    %274 = arith.addf %269, %273 : vector<4x256xf32>
    %c241_i32_43 = arith.constant 241 : i32
    %275 = tpu.dynamic_rotate %136 by %c241_i32_43 dim 1 : vector<4x256xf32>, i32 -> vector<4x256xf32>
    %cst_44 = arith.constant 0.000000e+00 : f32
    %276 = vector.broadcast %cst_44 : f32 to vector<4x256xf32>
    %277 = arith.select %39, %275, %276 : vector<4x256xi1>, vector<4x256xf32>
    %278 = vector.extract_strided_slice %277 {offsets = [0, 0], sizes = [1, 256], strides = [1, 1]} : vector<4x256xf32> to vector<1x256xf32>
    %279 = vector.broadcast %52 : vector<4x1xf32> to vector<4x256xf32>
    %280 = vector.broadcast %278 : vector<1x256xf32> to vector<4x256xf32>
    %281 = arith.mulf %279, %280 : vector<4x256xf32>
    %282 = arith.addf %274, %281 : vector<4x256xf32>
    %283 = vector.extract_strided_slice %277 {offsets = [1, 0], sizes = [1, 256], strides = [1, 1]} : vector<4x256xf32> to vector<1x256xf32>
    %284 = vector.broadcast %61 : vector<4x1xf32> to vector<4x256xf32>
    %285 = vector.broadcast %283 : vector<1x256xf32> to vector<4x256xf32>
    %286 = arith.mulf %284, %285 : vector<4x256xf32>
    %287 = arith.addf %282, %286 : vector<4x256xf32>
    %288 = vector.extract_strided_slice %277 {offsets = [2, 0], sizes = [1, 256], strides = [1, 1]} : vector<4x256xf32> to vector<1x256xf32>
    %289 = vector.broadcast %70 : vector<4x1xf32> to vector<4x256xf32>
    %290 = vector.broadcast %288 : vector<1x256xf32> to vector<4x256xf32>
    %291 = arith.mulf %289, %290 : vector<4x256xf32>
    %292 = arith.addf %287, %291 : vector<4x256xf32>
    %293 = vector.extract_strided_slice %277 {offsets = [3, 0], sizes = [1, 256], strides = [1, 1]} : vector<4x256xf32> to vector<1x256xf32>
    %294 = vector.broadcast %79 : vector<4x1xf32> to vector<4x256xf32>
    %295 = vector.broadcast %293 : vector<1x256xf32> to vector<4x256xf32>
    %296 = arith.mulf %294, %295 : vector<4x256xf32>
    %297 = arith.addf %292, %296 : vector<4x256xf32>
    %c240_i32_45 = arith.constant 240 : i32
    %298 = tpu.dynamic_rotate %136 by %c240_i32_45 dim 1 : vector<4x256xf32>, i32 -> vector<4x256xf32>
    %cst_46 = arith.constant 0.000000e+00 : f32
    %299 = vector.broadcast %cst_46 : f32 to vector<4x256xf32>
    %300 = arith.select %41, %298, %299 : vector<4x256xi1>, vector<4x256xf32>
    %301 = vector.extract_strided_slice %300 {offsets = [0, 0], sizes = [1, 256], strides = [1, 1]} : vector<4x256xf32> to vector<1x256xf32>
    %302 = vector.broadcast %53 : vector<4x1xf32> to vector<4x256xf32>
    %303 = vector.broadcast %301 : vector<1x256xf32> to vector<4x256xf32>
    %304 = arith.mulf %302, %303 : vector<4x256xf32>
    %305 = arith.addf %297, %304 : vector<4x256xf32>
    %306 = vector.extract_strided_slice %300 {offsets = [1, 0], sizes = [1, 256], strides = [1, 1]} : vector<4x256xf32> to vector<1x256xf32>
    %307 = vector.broadcast %62 : vector<4x1xf32> to vector<4x256xf32>
    %308 = vector.broadcast %306 : vector<1x256xf32> to vector<4x256xf32>
    %309 = arith.mulf %307, %308 : vector<4x256xf32>
    %310 = arith.addf %305, %309 : vector<4x256xf32>
    %311 = vector.extract_strided_slice %300 {offsets = [2, 0], sizes = [1, 256], strides = [1, 1]} : vector<4x256xf32> to vector<1x256xf32>
    %312 = vector.broadcast %71 : vector<4x1xf32> to vector<4x256xf32>
    %313 = vector.broadcast %311 : vector<1x256xf32> to vector<4x256xf32>
    %314 = arith.mulf %312, %313 : vector<4x256xf32>
    %315 = arith.addf %310, %314 : vector<4x256xf32>
    %316 = vector.extract_strided_slice %300 {offsets = [3, 0], sizes = [1, 256], strides = [1, 1]} : vector<4x256xf32> to vector<1x256xf32>
    %317 = vector.broadcast %80 : vector<4x1xf32> to vector<4x256xf32>
    %318 = vector.broadcast %316 : vector<1x256xf32> to vector<4x256xf32>
    %319 = arith.mulf %317, %318 : vector<4x256xf32>
    %320 = arith.addf %315, %319 : vector<4x256xf32>
    %c239_i32_47 = arith.constant 239 : i32
    %321 = tpu.dynamic_rotate %136 by %c239_i32_47 dim 1 : vector<4x256xf32>, i32 -> vector<4x256xf32>
    %cst_48 = arith.constant 0.000000e+00 : f32
    %322 = vector.broadcast %cst_48 : f32 to vector<4x256xf32>
    %323 = arith.select %44, %321, %322 : vector<4x256xi1>, vector<4x256xf32>
    %324 = vector.extract_strided_slice %323 {offsets = [0, 0], sizes = [1, 256], strides = [1, 1]} : vector<4x256xf32> to vector<1x256xf32>
    %325 = vector.broadcast %54 : vector<4x1xf32> to vector<4x256xf32>
    %326 = vector.broadcast %324 : vector<1x256xf32> to vector<4x256xf32>
    %327 = arith.mulf %325, %326 : vector<4x256xf32>
    %328 = arith.addf %320, %327 : vector<4x256xf32>
    %329 = vector.extract_strided_slice %323 {offsets = [1, 0], sizes = [1, 256], strides = [1, 1]} : vector<4x256xf32> to vector<1x256xf32>
    %330 = vector.broadcast %63 : vector<4x1xf32> to vector<4x256xf32>
    %331 = vector.broadcast %329 : vector<1x256xf32> to vector<4x256xf32>
    %332 = arith.mulf %330, %331 : vector<4x256xf32>
    %333 = arith.addf %328, %332 : vector<4x256xf32>
    %334 = vector.extract_strided_slice %323 {offsets = [2, 0], sizes = [1, 256], strides = [1, 1]} : vector<4x256xf32> to vector<1x256xf32>
    %335 = vector.broadcast %72 : vector<4x1xf32> to vector<4x256xf32>
    %336 = vector.broadcast %334 : vector<1x256xf32> to vector<4x256xf32>
    %337 = arith.mulf %335, %336 : vector<4x256xf32>
    %338 = arith.addf %333, %337 : vector<4x256xf32>
    %339 = vector.extract_strided_slice %323 {offsets = [3, 0], sizes = [1, 256], strides = [1, 1]} : vector<4x256xf32> to vector<1x256xf32>
    %340 = vector.broadcast %81 : vector<4x1xf32> to vector<4x256xf32>
    %341 = vector.broadcast %339 : vector<1x256xf32> to vector<4x256xf32>
    %342 = arith.mulf %340, %341 : vector<4x256xf32>
    %343 = arith.addf %338, %342 : vector<4x256xf32>
    %cst_49 = arith.constant 0.000000e+00 : f32
    %344 = vector.broadcast %cst_49 : f32 to vector<4x256xf32>
    %345 = arith.subf %344, %343 : vector<4x256xf32>
    %346 = math.exp %345 : vector<4x256xf32>
    %cst_50 = arith.constant 1.000000e+00 : f32
    %347 = vector.broadcast %cst_50 : f32 to vector<4x256xf32>
    %348 = arith.addf %347, %346 : vector<4x256xf32>
    %349 = tpu.reciprocal %348 : vector<4x256xf32> -> vector<4x256xf32>
    %350 = arith.mulf %84, %349 : vector<4x256xf32>
    %c0_51 = arith.constant 0 : index
    %c0_52 = arith.constant 0 : index
    %c0_53 = arith.constant 0 : index
    %351 = vector.load %arg4[%c0_51, %c0_52, %c0_53] : memref<2x4x256xf32, #tpu.memory_space<vmem>>, vector<1x4x256xf32>
    %352 = vector.shape_cast %351 : vector<1x4x256xf32> to vector<4x256xf32>
    %353 = vector.shape_cast %350 : vector<4x256xf32> to vector<1x4x256xf32>
    tpu.vector_store %arg4[%c0_51, %c0_52, %c0_53], %353 {strides = array<i32>} : memref<2x4x256xf32, #tpu.memory_space<vmem>>, vector<1x4x256xf32>,
    %c1 = arith.constant 1 : index
    %c0_54 = arith.constant 0 : index
    %c0_55 = arith.constant 0 : index
    %354 = vector.load %arg1[%c1, %c0_54, %c0_55] : memref<2x4x256xf32, #tpu.memory_space<vmem>>, vector<1x4x256xf32>
    %355 = vector.shape_cast %354 : vector<1x4x256xf32> to vector<4x256xf32>
    %cst_56 = arith.constant 0.000000e+00 : f32
    %356 = vector.broadcast %cst_56 : f32 to vector<4x256xf32>
    %c17_i32_57 = arith.constant 17 : i32
    %357 = tpu.dynamic_rotate %355 by %c17_i32_57 dim 1 : vector<4x256xf32>, i32 -> vector<4x256xf32>
    %cst_58 = arith.constant 0.000000e+00 : f32
    %358 = vector.broadcast %cst_58 : f32 to vector<4x256xf32>
    %359 = arith.select %27, %357, %358 : vector<4x256xi1>, vector<4x256xf32>
    %cst_59 = arith.constant -1.000000e+00 : f32
    %360 = vector.broadcast %cst_59 : f32 to vector<4x256xf32>
    %361 = arith.mulf %360, %359 : vector<4x256xf32>
    %362 = arith.addf %356, %361 : vector<4x256xf32>
    %c16_i32_60 = arith.constant 16 : i32
    %363 = tpu.dynamic_rotate %355 by %c16_i32_60 dim 1 : vector<4x256xf32>, i32 -> vector<4x256xf32>
    %cst_61 = arith.constant 0.000000e+00 : f32
    %364 = vector.broadcast %cst_61 : f32 to vector<4x256xf32>
    %365 = arith.select %29, %363, %364 : vector<4x256xi1>, vector<4x256xf32>
    %cst_62 = arith.constant -1.000000e+00 : f32
    %366 = vector.broadcast %cst_62 : f32 to vector<4x256xf32>
    %367 = arith.mulf %366, %365 : vector<4x256xf32>
    %368 = arith.addf %362, %367 : vector<4x256xf32>
    %c15_i32_63 = arith.constant 15 : i32
    %369 = tpu.dynamic_rotate %355 by %c15_i32_63 dim 1 : vector<4x256xf32>, i32 -> vector<4x256xf32>
    %cst_64 = arith.constant 0.000000e+00 : f32
    %370 = vector.broadcast %cst_64 : f32 to vector<4x256xf32>
    %371 = arith.select %32, %369, %370 : vector<4x256xi1>, vector<4x256xf32>
    %cst_65 = arith.constant -1.000000e+00 : f32
    %372 = vector.broadcast %cst_65 : f32 to vector<4x256xf32>
    %373 = arith.mulf %372, %371 : vector<4x256xf32>
    %374 = arith.addf %368, %373 : vector<4x256xf32>
    %c1_i32_66 = arith.constant 1 : i32
    %375 = tpu.dynamic_rotate %355 by %c1_i32_66 dim 1 : vector<4x256xf32>, i32 -> vector<4x256xf32>
    %cst_67 = arith.constant 0.000000e+00 : f32
    %376 = vector.broadcast %cst_67 : f32 to vector<4x256xf32>
    %377 = arith.select %34, %375, %376 : vector<4x256xi1>, vector<4x256xf32>
    %cst_68 = arith.constant -1.000000e+00 : f32
    %378 = vector.broadcast %cst_68 : f32 to vector<4x256xf32>
    %379 = arith.mulf %378, %377 : vector<4x256xf32>
    %380 = arith.addf %374, %379 : vector<4x256xf32>
    %cst_69 = arith.constant 8.000000e+00 : f32
    %381 = vector.broadcast %cst_69 : f32 to vector<4x256xf32>
    %382 = arith.mulf %381, %355 : vector<4x256xf32>
    %383 = arith.addf %380, %382 : vector<4x256xf32>
    %c255_i32_70 = arith.constant 255 : i32
    %384 = tpu.dynamic_rotate %355 by %c255_i32_70 dim 1 : vector<4x256xf32>, i32 -> vector<4x256xf32>
    %cst_71 = arith.constant 0.000000e+00 : f32
    %385 = vector.broadcast %cst_71 : f32 to vector<4x256xf32>
    %386 = arith.select %36, %384, %385 : vector<4x256xi1>, vector<4x256xf32>
    %cst_72 = arith.constant -1.000000e+00 : f32
    %387 = vector.broadcast %cst_72 : f32 to vector<4x256xf32>
    %388 = arith.mulf %387, %386 : vector<4x256xf32>
    %389 = arith.addf %383, %388 : vector<4x256xf32>
    %c241_i32_73 = arith.constant 241 : i32
    %390 = tpu.dynamic_rotate %355 by %c241_i32_73 dim 1 : vector<4x256xf32>, i32 -> vector<4x256xf32>
    %cst_74 = arith.constant 0.000000e+00 : f32
    %391 = vector.broadcast %cst_74 : f32 to vector<4x256xf32>
    %392 = arith.select %39, %390, %391 : vector<4x256xi1>, vector<4x256xf32>
    %cst_75 = arith.constant -1.000000e+00 : f32
    %393 = vector.broadcast %cst_75 : f32 to vector<4x256xf32>
    %394 = arith.mulf %393, %392 : vector<4x256xf32>
    %395 = arith.addf %389, %394 : vector<4x256xf32>
    %c240_i32_76 = arith.constant 240 : i32
    %396 = tpu.dynamic_rotate %355 by %c240_i32_76 dim 1 : vector<4x256xf32>, i32 -> vector<4x256xf32>
    %cst_77 = arith.constant 0.000000e+00 : f32
    %397 = vector.broadcast %cst_77 : f32 to vector<4x256xf32>
    %398 = arith.select %41, %396, %397 : vector<4x256xi1>, vector<4x256xf32>
    %cst_78 = arith.constant -1.000000e+00 : f32
    %399 = vector.broadcast %cst_78 : f32 to vector<4x256xf32>
    %400 = arith.mulf %399, %398 : vector<4x256xf32>
    %401 = arith.addf %395, %400 : vector<4x256xf32>
    %c239_i32_79 = arith.constant 239 : i32
    %402 = tpu.dynamic_rotate %355 by %c239_i32_79 dim 1 : vector<4x256xf32>, i32 -> vector<4x256xf32>
    %cst_80 = arith.constant 0.000000e+00 : f32
    %403 = vector.broadcast %cst_80 : f32 to vector<4x256xf32>
    %404 = arith.select %44, %402, %403 : vector<4x256xi1>, vector<4x256xf32>
    %cst_81 = arith.constant -1.000000e+00 : f32
    %405 = vector.broadcast %cst_81 : f32 to vector<4x256xf32>
    %406 = arith.mulf %405, %404 : vector<4x256xf32>
    %407 = arith.addf %401, %406 : vector<4x256xf32>
    %cst_82 = arith.constant 0.000000e+00 : f32
    %408 = vector.broadcast %cst_82 : f32 to vector<4x256xf32>
    %409 = vector.broadcast %82 : vector<4x1xf32> to vector<4x256xf32>
    %410 = arith.addf %408, %409 : vector<4x256xf32>
    %c17_i32_83 = arith.constant 17 : i32
    %411 = tpu.dynamic_rotate %407 by %c17_i32_83 dim 1 : vector<4x256xf32>, i32 -> vector<4x256xf32>
    %cst_84 = arith.constant 0.000000e+00 : f32
    %412 = vector.broadcast %cst_84 : f32 to vector<4x256xf32>
    %413 = arith.select %27, %411, %412 : vector<4x256xi1>, vector<4x256xf32>
    %414 = vector.extract_strided_slice %413 {offsets = [0, 0], sizes = [1, 256], strides = [1, 1]} : vector<4x256xf32> to vector<1x256xf32>
    %415 = vector.broadcast %46 : vector<4x1xf32> to vector<4x256xf32>
    %416 = vector.broadcast %414 : vector<1x256xf32> to vector<4x256xf32>
    %417 = arith.mulf %415, %416 : vector<4x256xf32>
    %418 = arith.addf %410, %417 : vector<4x256xf32>
    %419 = vector.extract_strided_slice %413 {offsets = [1, 0], sizes = [1, 256], strides = [1, 1]} : vector<4x256xf32> to vector<1x256xf32>
    %420 = vector.broadcast %55 : vector<4x1xf32> to vector<4x256xf32>
    %421 = vector.broadcast %419 : vector<1x256xf32> to vector<4x256xf32>
    %422 = arith.mulf %420, %421 : vector<4x256xf32>
    %423 = arith.addf %418, %422 : vector<4x256xf32>
    %424 = vector.extract_strided_slice %413 {offsets = [2, 0], sizes = [1, 256], strides = [1, 1]} : vector<4x256xf32> to vector<1x256xf32>
    %425 = vector.broadcast %64 : vector<4x1xf32> to vector<4x256xf32>
    %426 = vector.broadcast %424 : vector<1x256xf32> to vector<4x256xf32>
    %427 = arith.mulf %425, %426 : vector<4x256xf32>
    %428 = arith.addf %423, %427 : vector<4x256xf32>
    %429 = vector.extract_strided_slice %413 {offsets = [3, 0], sizes = [1, 256], strides = [1, 1]} : vector<4x256xf32> to vector<1x256xf32>
    %430 = vector.broadcast %73 : vector<4x1xf32> to vector<4x256xf32>
    %431 = vector.broadcast %429 : vector<1x256xf32> to vector<4x256xf32>
    %432 = arith.mulf %430, %431 : vector<4x256xf32>
    %433 = arith.addf %428, %432 : vector<4x256xf32>
    %c16_i32_85 = arith.constant 16 : i32
    %434 = tpu.dynamic_rotate %407 by %c16_i32_85 dim 1 : vector<4x256xf32>, i32 -> vector<4x256xf32>
    %cst_86 = arith.constant 0.000000e+00 : f32
    %435 = vector.broadcast %cst_86 : f32 to vector<4x256xf32>
    %436 = arith.select %29, %434, %435 : vector<4x256xi1>, vector<4x256xf32>
    %437 = vector.extract_strided_slice %436 {offsets = [0, 0], sizes = [1, 256], strides = [1, 1]} : vector<4x256xf32> to vector<1x256xf32>
    %438 = vector.broadcast %47 : vector<4x1xf32> to vector<4x256xf32>
    %439 = vector.broadcast %437 : vector<1x256xf32> to vector<4x256xf32>
    %440 = arith.mulf %438, %439 : vector<4x256xf32>
    %441 = arith.addf %433, %440 : vector<4x256xf32>
    %442 = vector.extract_strided_slice %436 {offsets = [1, 0], sizes = [1, 256], strides = [1, 1]} : vector<4x256xf32> to vector<1x256xf32>
    %443 = vector.broadcast %56 : vector<4x1xf32> to vector<4x256xf32>
    %444 = vector.broadcast %442 : vector<1x256xf32> to vector<4x256xf32>
    %445 = arith.mulf %443, %444 : vector<4x256xf32>
    %446 = arith.addf %441, %445 : vector<4x256xf32>
    %447 = vector.extract_strided_slice %436 {offsets = [2, 0], sizes = [1, 256], strides = [1, 1]} : vector<4x256xf32> to vector<1x256xf32>
    %448 = vector.broadcast %65 : vector<4x1xf32> to vector<4x256xf32>
    %449 = vector.broadcast %447 : vector<1x256xf32> to vector<4x256xf32>
    %450 = arith.mulf %448, %449 : vector<4x256xf32>
    %451 = arith.addf %446, %450 : vector<4x256xf32>
    %452 = vector.extract_strided_slice %436 {offsets = [3, 0], sizes = [1, 256], strides = [1, 1]} : vector<4x256xf32> to vector<1x256xf32>
    %453 = vector.broadcast %74 : vector<4x1xf32> to vector<4x256xf32>
    %454 = vector.broadcast %452 : vector<1x256xf32> to vector<4x256xf32>
    %455 = arith.mulf %453, %454 : vector<4x256xf32>
    %456 = arith.addf %451, %455 : vector<4x256xf32>
    %c15_i32_87 = arith.constant 15 : i32
    %457 = tpu.dynamic_rotate %407 by %c15_i32_87 dim 1 : vector<4x256xf32>, i32 -> vector<4x256xf32>
    %cst_88 = arith.constant 0.000000e+00 : f32
    %458 = vector.broadcast %cst_88 : f32 to vector<4x256xf32>
    %459 = arith.select %32, %457, %458 : vector<4x256xi1>, vector<4x256xf32>
    %460 = vector.extract_strided_slice %459 {offsets = [0, 0], sizes = [1, 256], strides = [1, 1]} : vector<4x256xf32> to vector<1x256xf32>
    %461 = vector.broadcast %48 : vector<4x1xf32> to vector<4x256xf32>
    %462 = vector.broadcast %460 : vector<1x256xf32> to vector<4x256xf32>
    %463 = arith.mulf %461, %462 : vector<4x256xf32>
    %464 = arith.addf %456, %463 : vector<4x256xf32>
    %465 = vector.extract_strided_slice %459 {offsets = [1, 0], sizes = [1, 256], strides = [1, 1]} : vector<4x256xf32> to vector<1x256xf32>
    %466 = vector.broadcast %57 : vector<4x1xf32> to vector<4x256xf32>
    %467 = vector.broadcast %465 : vector<1x256xf32> to vector<4x256xf32>
    %468 = arith.mulf %466, %467 : vector<4x256xf32>
    %469 = arith.addf %464, %468 : vector<4x256xf32>
    %470 = vector.extract_strided_slice %459 {offsets = [2, 0], sizes = [1, 256], strides = [1, 1]} : vector<4x256xf32> to vector<1x256xf32>
    %471 = vector.broadcast %66 : vector<4x1xf32> to vector<4x256xf32>
    %472 = vector.broadcast %470 : vector<1x256xf32> to vector<4x256xf32>
    %473 = arith.mulf %471, %472 : vector<4x256xf32>
    %474 = arith.addf %469, %473 : vector<4x256xf32>
    %475 = vector.extract_strided_slice %459 {offsets = [3, 0], sizes = [1, 256], strides = [1, 1]} : vector<4x256xf32> to vector<1x256xf32>
    %476 = vector.broadcast %75 : vector<4x1xf32> to vector<4x256xf32>
    %477 = vector.broadcast %475 : vector<1x256xf32> to vector<4x256xf32>
    %478 = arith.mulf %476, %477 : vector<4x256xf32>
    %479 = arith.addf %474, %478 : vector<4x256xf32>
    %c1_i32_89 = arith.constant 1 : i32
    %480 = tpu.dynamic_rotate %407 by %c1_i32_89 dim 1 : vector<4x256xf32>, i32 -> vector<4x256xf32>
    %cst_90 = arith.constant 0.000000e+00 : f32
    %481 = vector.broadcast %cst_90 : f32 to vector<4x256xf32>
    %482 = arith.select %34, %480, %481 : vector<4x256xi1>, vector<4x256xf32>
    %483 = vector.extract_strided_slice %482 {offsets = [0, 0], sizes = [1, 256], strides = [1, 1]} : vector<4x256xf32> to vector<1x256xf32>
    %484 = vector.broadcast %49 : vector<4x1xf32> to vector<4x256xf32>
    %485 = vector.broadcast %483 : vector<1x256xf32> to vector<4x256xf32>
    %486 = arith.mulf %484, %485 : vector<4x256xf32>
    %487 = arith.addf %479, %486 : vector<4x256xf32>
    %488 = vector.extract_strided_slice %482 {offsets = [1, 0], sizes = [1, 256], strides = [1, 1]} : vector<4x256xf32> to vector<1x256xf32>
    %489 = vector.broadcast %58 : vector<4x1xf32> to vector<4x256xf32>
    %490 = vector.broadcast %488 : vector<1x256xf32> to vector<4x256xf32>
    %491 = arith.mulf %489, %490 : vector<4x256xf32>
    %492 = arith.addf %487, %491 : vector<4x256xf32>
    %493 = vector.extract_strided_slice %482 {offsets = [2, 0], sizes = [1, 256], strides = [1, 1]} : vector<4x256xf32> to vector<1x256xf32>
    %494 = vector.broadcast %67 : vector<4x1xf32> to vector<4x256xf32>
    %495 = vector.broadcast %493 : vector<1x256xf32> to vector<4x256xf32>
    %496 = arith.mulf %494, %495 : vector<4x256xf32>
    %497 = arith.addf %492, %496 : vector<4x256xf32>
    %498 = vector.extract_strided_slice %482 {offsets = [3, 0], sizes = [1, 256], strides = [1, 1]} : vector<4x256xf32> to vector<1x256xf32>
    %499 = vector.broadcast %76 : vector<4x1xf32> to vector<4x256xf32>
    %500 = vector.broadcast %498 : vector<1x256xf32> to vector<4x256xf32>
    %501 = arith.mulf %499, %500 : vector<4x256xf32>
    %502 = arith.addf %497, %501 : vector<4x256xf32>
    %503 = vector.extract_strided_slice %407 {offsets = [0, 0], sizes = [1, 256], strides = [1, 1]} : vector<4x256xf32> to vector<1x256xf32>
    %504 = vector.broadcast %50 : vector<4x1xf32> to vector<4x256xf32>
    %505 = vector.broadcast %503 : vector<1x256xf32> to vector<4x256xf32>
    %506 = arith.mulf %504, %505 : vector<4x256xf32>
    %507 = arith.addf %502, %506 : vector<4x256xf32>
    %508 = vector.extract_strided_slice %407 {offsets = [1, 0], sizes = [1, 256], strides = [1, 1]} : vector<4x256xf32> to vector<1x256xf32>
    %509 = vector.broadcast %59 : vector<4x1xf32> to vector<4x256xf32>
    %510 = vector.broadcast %508 : vector<1x256xf32> to vector<4x256xf32>
    %511 = arith.mulf %509, %510 : vector<4x256xf32>
    %512 = arith.addf %507, %511 : vector<4x256xf32>
    %513 = vector.extract_strided_slice %407 {offsets = [2, 0], sizes = [1, 256], strides = [1, 1]} : vector<4x256xf32> to vector<1x256xf32>
    %514 = vector.broadcast %68 : vector<4x1xf32> to vector<4x256xf32>
    %515 = vector.broadcast %513 : vector<1x256xf32> to vector<4x256xf32>
    %516 = arith.mulf %514, %515 : vector<4x256xf32>
    %517 = arith.addf %512, %516 : vector<4x256xf32>
    %518 = vector.extract_strided_slice %407 {offsets = [3, 0], sizes = [1, 256], strides = [1, 1]} : vector<4x256xf32> to vector<1x256xf32>
    %519 = vector.broadcast %77 : vector<4x1xf32> to vector<4x256xf32>
    %520 = vector.broadcast %518 : vector<1x256xf32> to vector<4x256xf32>
    %521 = arith.mulf %519, %520 : vector<4x256xf32>
    %522 = arith.addf %517, %521 : vector<4x256xf32>
    %c255_i32_91 = arith.constant 255 : i32
    %523 = tpu.dynamic_rotate %407 by %c255_i32_91 dim 1 : vector<4x256xf32>, i32 -> vector<4x256xf32>
    %cst_92 = arith.constant 0.000000e+00 : f32
    %524 = vector.broadcast %cst_92 : f32 to vector<4x256xf32>
    %525 = arith.select %36, %523, %524 : vector<4x256xi1>, vector<4x256xf32>
    %526 = vector.extract_strided_slice %525 {offsets = [0, 0], sizes = [1, 256], strides = [1, 1]} : vector<4x256xf32> to vector<1x256xf32>
    %527 = vector.broadcast %51 : vector<4x1xf32> to vector<4x256xf32>
    %528 = vector.broadcast %526 : vector<1x256xf32> to vector<4x256xf32>
    %529 = arith.mulf %527, %528 : vector<4x256xf32>
    %530 = arith.addf %522, %529 : vector<4x256xf32>
    %531 = vector.extract_strided_slice %525 {offsets = [1, 0], sizes = [1, 256], strides = [1, 1]} : vector<4x256xf32> to vector<1x256xf32>
    %532 = vector.broadcast %60 : vector<4x1xf32> to vector<4x256xf32>
    %533 = vector.broadcast %531 : vector<1x256xf32> to vector<4x256xf32>
    %534 = arith.mulf %532, %533 : vector<4x256xf32>
    %535 = arith.addf %530, %534 : vector<4x256xf32>
    %536 = vector.extract_strided_slice %525 {offsets = [2, 0], sizes = [1, 256], strides = [1, 1]} : vector<4x256xf32> to vector<1x256xf32>
    %537 = vector.broadcast %69 : vector<4x1xf32> to vector<4x256xf32>
    %538 = vector.broadcast %536 : vector<1x256xf32> to vector<4x256xf32>
    %539 = arith.mulf %537, %538 : vector<4x256xf32>
    %540 = arith.addf %535, %539 : vector<4x256xf32>
    %541 = vector.extract_strided_slice %525 {offsets = [3, 0], sizes = [1, 256], strides = [1, 1]} : vector<4x256xf32> to vector<1x256xf32>
    %542 = vector.broadcast %78 : vector<4x1xf32> to vector<4x256xf32>
    %543 = vector.broadcast %541 : vector<1x256xf32> to vector<4x256xf32>
    %544 = arith.mulf %542, %543 : vector<4x256xf32>
    %545 = arith.addf %540, %544 : vector<4x256xf32>
    %c241_i32_93 = arith.constant 241 : i32
    %546 = tpu.dynamic_rotate %407 by %c241_i32_93 dim 1 : vector<4x256xf32>, i32 -> vector<4x256xf32>
    %cst_94 = arith.constant 0.000000e+00 : f32
    %547 = vector.broadcast %cst_94 : f32 to vector<4x256xf32>
    %548 = arith.select %39, %546, %547 : vector<4x256xi1>, vector<4x256xf32>
    %549 = vector.extract_strided_slice %548 {offsets = [0, 0], sizes = [1, 256], strides = [1, 1]} : vector<4x256xf32> to vector<1x256xf32>
    %550 = vector.broadcast %52 : vector<4x1xf32> to vector<4x256xf32>
    %551 = vector.broadcast %549 : vector<1x256xf32> to vector<4x256xf32>
    %552 = arith.mulf %550, %551 : vector<4x256xf32>
    %553 = arith.addf %545, %552 : vector<4x256xf32>
    %554 = vector.extract_strided_slice %548 {offsets = [1, 0], sizes = [1, 256], strides = [1, 1]} : vector<4x256xf32> to vector<1x256xf32>
    %555 = vector.broadcast %61 : vector<4x1xf32> to vector<4x256xf32>
    %556 = vector.broadcast %554 : vector<1x256xf32> to vector<4x256xf32>
    %557 = arith.mulf %555, %556 : vector<4x256xf32>
    %558 = arith.addf %553, %557 : vector<4x256xf32>
    %559 = vector.extract_strided_slice %548 {offsets = [2, 0], sizes = [1, 256], strides = [1, 1]} : vector<4x256xf32> to vector<1x256xf32>
    %560 = vector.broadcast %70 : vector<4x1xf32> to vector<4x256xf32>
    %561 = vector.broadcast %559 : vector<1x256xf32> to vector<4x256xf32>
    %562 = arith.mulf %560, %561 : vector<4x256xf32>
    %563 = arith.addf %558, %562 : vector<4x256xf32>
    %564 = vector.extract_strided_slice %548 {offsets = [3, 0], sizes = [1, 256], strides = [1, 1]} : vector<4x256xf32> to vector<1x256xf32>
    %565 = vector.broadcast %79 : vector<4x1xf32> to vector<4x256xf32>
    %566 = vector.broadcast %564 : vector<1x256xf32> to vector<4x256xf32>
    %567 = arith.mulf %565, %566 : vector<4x256xf32>
    %568 = arith.addf %563, %567 : vector<4x256xf32>
    %c240_i32_95 = arith.constant 240 : i32
    %569 = tpu.dynamic_rotate %407 by %c240_i32_95 dim 1 : vector<4x256xf32>, i32 -> vector<4x256xf32>
    %cst_96 = arith.constant 0.000000e+00 : f32
    %570 = vector.broadcast %cst_96 : f32 to vector<4x256xf32>
    %571 = arith.select %41, %569, %570 : vector<4x256xi1>, vector<4x256xf32>
    %572 = vector.extract_strided_slice %571 {offsets = [0, 0], sizes = [1, 256], strides = [1, 1]} : vector<4x256xf32> to vector<1x256xf32>
    %573 = vector.broadcast %53 : vector<4x1xf32> to vector<4x256xf32>
    %574 = vector.broadcast %572 : vector<1x256xf32> to vector<4x256xf32>
    %575 = arith.mulf %573, %574 : vector<4x256xf32>
    %576 = arith.addf %568, %575 : vector<4x256xf32>
    %577 = vector.extract_strided_slice %571 {offsets = [1, 0], sizes = [1, 256], strides = [1, 1]} : vector<4x256xf32> to vector<1x256xf32>
    %578 = vector.broadcast %62 : vector<4x1xf32> to vector<4x256xf32>
    %579 = vector.broadcast %577 : vector<1x256xf32> to vector<4x256xf32>
    %580 = arith.mulf %578, %579 : vector<4x256xf32>
    %581 = arith.addf %576, %580 : vector<4x256xf32>
    %582 = vector.extract_strided_slice %571 {offsets = [2, 0], sizes = [1, 256], strides = [1, 1]} : vector<4x256xf32> to vector<1x256xf32>
    %583 = vector.broadcast %71 : vector<4x1xf32> to vector<4x256xf32>
    %584 = vector.broadcast %582 : vector<1x256xf32> to vector<4x256xf32>
    %585 = arith.mulf %583, %584 : vector<4x256xf32>
    %586 = arith.addf %581, %585 : vector<4x256xf32>
    %587 = vector.extract_strided_slice %571 {offsets = [3, 0], sizes = [1, 256], strides = [1, 1]} : vector<4x256xf32> to vector<1x256xf32>
    %588 = vector.broadcast %80 : vector<4x1xf32> to vector<4x256xf32>
    %589 = vector.broadcast %587 : vector<1x256xf32> to vector<4x256xf32>
    %590 = arith.mulf %588, %589 : vector<4x256xf32>
    %591 = arith.addf %586, %590 : vector<4x256xf32>
    %c239_i32_97 = arith.constant 239 : i32
    %592 = tpu.dynamic_rotate %407 by %c239_i32_97 dim 1 : vector<4x256xf32>, i32 -> vector<4x256xf32>
    %cst_98 = arith.constant 0.000000e+00 : f32
    %593 = vector.broadcast %cst_98 : f32 to vector<4x256xf32>
    %594 = arith.select %44, %592, %593 : vector<4x256xi1>, vector<4x256xf32>
    %595 = vector.extract_strided_slice %594 {offsets = [0, 0], sizes = [1, 256], strides = [1, 1]} : vector<4x256xf32> to vector<1x256xf32>
    %596 = vector.broadcast %54 : vector<4x1xf32> to vector<4x256xf32>
    %597 = vector.broadcast %595 : vector<1x256xf32> to vector<4x256xf32>
    %598 = arith.mulf %596, %597 : vector<4x256xf32>
    %599 = arith.addf %591, %598 : vector<4x256xf32>
    %600 = vector.extract_strided_slice %594 {offsets = [1, 0], sizes = [1, 256], strides = [1, 1]} : vector<4x256xf32> to vector<1x256xf32>
    %601 = vector.broadcast %63 : vector<4x1xf32> to vector<4x256xf32>
    %602 = vector.broadcast %600 : vector<1x256xf32> to vector<4x256xf32>
    %603 = arith.mulf %601, %602 : vector<4x256xf32>
    %604 = arith.addf %599, %603 : vector<4x256xf32>
    %605 = vector.extract_strided_slice %594 {offsets = [2, 0], sizes = [1, 256], strides = [1, 1]} : vector<4x256xf32> to vector<1x256xf32>
    %606 = vector.broadcast %72 : vector<4x1xf32> to vector<4x256xf32>
    %607 = vector.broadcast %605 : vector<1x256xf32> to vector<4x256xf32>
    %608 = arith.mulf %606, %607 : vector<4x256xf32>
    %609 = arith.addf %604, %608 : vector<4x256xf32>
    %610 = vector.extract_strided_slice %594 {offsets = [3, 0], sizes = [1, 256], strides = [1, 1]} : vector<4x256xf32> to vector<1x256xf32>
    %611 = vector.broadcast %81 : vector<4x1xf32> to vector<4x256xf32>
    %612 = vector.broadcast %610 : vector<1x256xf32> to vector<4x256xf32>
    %613 = arith.mulf %611, %612 : vector<4x256xf32>
    %614 = arith.addf %609, %613 : vector<4x256xf32>
    %cst_99 = arith.constant 0.000000e+00 : f32
    %615 = vector.broadcast %cst_99 : f32 to vector<4x256xf32>
    %616 = arith.subf %615, %614 : vector<4x256xf32>
    %617 = math.exp %616 : vector<4x256xf32>
    %cst_100 = arith.constant 1.000000e+00 : f32
    %618 = vector.broadcast %cst_100 : f32 to vector<4x256xf32>
    %619 = arith.addf %618, %617 : vector<4x256xf32>
    %620 = tpu.reciprocal %619 : vector<4x256xf32> -> vector<4x256xf32>
    %621 = arith.mulf %355, %620 : vector<4x256xf32>
    %c1_101 = arith.constant 1 : index
    %c0_102 = arith.constant 0 : index
    %c0_103 = arith.constant 0 : index
    %622 = vector.load %arg4[%c1_101, %c0_102, %c0_103] : memref<2x4x256xf32, #tpu.memory_space<vmem>>, vector<1x4x256xf32>
    %623 = vector.shape_cast %622 : vector<1x4x256xf32> to vector<4x256xf32>
    %624 = vector.shape_cast %621 : vector<4x256xf32> to vector<1x4x256xf32>
    tpu.vector_store %arg4[%c1_101, %c0_102, %c0_103], %624 {strides = array<i32>} : memref<2x4x256xf32, #tpu.memory_space<vmem>>, vector<1x4x256xf32>,
    return
  }
  func.func @transform_0(%arg0: i32) -> (i32, i32, i32) {
    %c0_i32 = arith.constant 0 : i32
    %c0_i32_0 = arith.constant 0 : i32
    %c0_i32_1 = arith.constant 0 : i32
    return %arg0, %c0_i32, %c0_i32_0 : i32, i32, i32
  }
  func.func @transform_1(%arg0: i32) -> (i32, i32) {
    %c0_i32 = arith.constant 0 : i32
    %c0_i32_0 = arith.constant 0 : i32
    %c0_i32_1 = arith.constant 0 : i32
    return %c0_i32, %c0_i32_0 : i32, i32
  }
  func.func @transform_2(%arg0: i32) -> (i32, i32) {
    %c0_i32 = arith.constant 0 : i32
    %c0_i32_0 = arith.constant 0 : i32
    %c0_i32_1 = arith.constant 0 : i32
    return %c0_i32, %c0_i32_0 : i32, i32
  }
  func.func @transform_3(%arg0: i32) -> (i32, i32, i32) {
    %c0_i32 = arith.constant 0 : i32
    %c0_i32_0 = arith.constant 0 : i32
    %c0_i32_1 = arith.constant 0 : i32
    return %arg0, %c0_i32, %c0_i32_0 : i32, i32, i32
  }
}

</mosaic_0001>

<bundles_post_ra>
// kernel: tpu_custom_call.1
= control target key start
LH: loop header
LB: loop body
LE: loop exit
PB: predicated region body
PF: predicated region fallthrough
CT: control target
= control target key end

     0   :  { %8 = vsyncpa [#allocation3], 0  ;;  %s2722_s0 = inlined_call_operand.hbm [shape: f32[2,4,256], index: 0, kind: input, shape index: {}]   ;;  %s2723_s1 = inlined_call_operand.vmem [shape: f32[4,36], index: 1, kind: input, shape index: {}]   ;;  %s2724_s2 = inlined_call_operand.vmem [shape: f32[4,1], index: 2, kind: input, shape index: {}]   ;;  %s2725_s3 = inlined_call_operand.hbm [shape: f32[2,4,256], index: 3, kind: output, shape index: {}]  }
   0x1   :  { %9 = vsyncpa [#allocation4], 0  ;;  %s1673_s12 = smov [#allocation2]   ;;  %s1625_s16 = scalar_lea.hbm %s2722_s0, 256 }
   0x2   :  { %s15_s13 = sshll.u32 %s1673_s12, 4  ;;  %p1626_p0 = scmp.ne.s32.totalorder %s2722_s0, %s1625_s16  ;;  %s16_s13 = int_to_ptr.vmem [resolvable:$true] %s15_s13 }
   0x3   :  { %p1629_p1 = scmp.lt.u32.totalorder %s1625_s16, %s2722_s0 }
   0x5   :  { %p1631_p2 = pnand %p1629_p1, %p1626_p0 }
   0x7   :  { %1634 = shalt.err (!%p1631_p2)
}
   0x8   :  { %s1635_s21 = scalar_lea.vmem %s16_s13, 256  ;;  %p1640_p4 = scmp.lt.s32.totalorder %s16_s13, %s16_s13 }
   0x9   :  { %p1636_p3 = scmp.ne.s32.totalorder %s16_s13, %s1635_s21  ;;  %p1641_p5 = scmp.lt.s32.totalorder %s1635_s21, %s1635_s21 }
   0xb   :  { %p1642_p6 = por %p1641_p5, %p1640_p4 }
   0xd   :  { %p1643_p7 = pnand %p1642_p6, %p1636_p3 }
   0xf   :  { %1646 = shalt.err (!%p1643_p7)
}
  0x10   :  { %s1674_s22 = smov 128   ;;  %s1675_s23 = smov 8  }
  0x11   :  { %21 = dma.hbm_to_vmem [thread:$0]  %s2722_s0, 256, %s16_s13, [#allocation3], %s1674_s22, %s1674_s22, %s1675_s23  }
  0x12   :  { %1669 = dma.done.wait [#allocation3], 256  }
  0x13   :  { %1670 = vsyncadd [#allocation3], 4294967040  ;;  %v1676_v0 = vmov 9   ;;  %v1756_v1 = vld [vmem:[#allocation2] sm:$0xff]  ;;  %s1677_s26 = smov 16   ;;  %s1678_s27 = smov 17   ;;  %v29_v29 = vlaneseq }
  0x14   :  { %1569 = vset.pattern.permute.xlu1 %v1676_v0  ;;  %110 = vrot.lane.b32.xlu0 %v1756_v1, %s1678_s27  ;;  %v108_v2 = vcombine.high %v1756_v1, %v1756_v1  ;;  %v1679_v3 = vmov 0   ;;  %s1680_s0 = smov 15   ;;  %s1681_s28 = smov 1   ;;  %v1781_v4 = vld [vmem:[#allocation2 + $0x8] sm:$0xff]  ;;  %v1815_v6 = vld [vmem:[%s2723_s1] sm:$0xf] }
  0x15   :  { %123 = vrot.lane.b32.xlu1 %v1756_v1, %s1677_s26  ;;  %1568 = vset.pattern.permute.xlu0 %v1679_v3  ;;  %s1682_s29 = smov 127   ;;  %s1683_s30 = smov 113   ;;  %v886_v5 = vcombine.high %v1781_v4, %v1781_v4  ;;  %v105_v7 = vld [vmem:[%s2724_s2] sm:$0xf]  ;;  %v1686_v8 = vmov 27   ;;  %v1687_v9 = vmov 18  }
  0x16   :  { %s1684_s4 = smov 112   ;;  %s1685_s5 = smov 111   ;;  %v1688_v10 = vmov 1   ;;  %v1689_v11 = vmov 10   ;;  %v1690_v12 = vmov 19   ;;  %v1691_v13 = vmov 2  }
  0x17   :  { %v1692_v14 = vmov 28   ;;  %v1693_v15 = vmov 29   ;;  %v1694_v16 = vmov 11   ;;  %v1695_v17 = vmov 21   ;;  %s1720_s1 = smov [#allocation5]  }
  0x18   :  { %136 = vrot.lane.b32.xlu0 %v1756_v1, %s1680_s0  ;;  %v1696_v18 = vmov 20   ;;  %v1697_v19 = vmov 13   ;;  %v1698_v20 = vmov 3   ;;  %v1699_v21 = vmov 12   ;;  %s1508_s2 = sshll.u32 %s1720_s1, 4  ;;  %s1509_s2 = int_to_ptr.vmem [resolvable:$true] %s1508_s2 }
  0x19   :  { %125 = vrot.lane.b32.xlu1 %v108_v2, %s1677_s26  ;;  %v1700_v22 = vmov 30   ;;  %v1701_v23 = vmov 4   ;;  %v1702_v28 = vmov 22   ;;  %v1838_v32 = vand.u32 127, %v29_v29  ;;  %s1647_s10 = scalar_lea.vmem %s1509_s2, 256  ;;  %p1652_p9 = scmp.lt.s32.totalorder %s1509_s2, %s1509_s2 }
  0x1a   :  { %p1648_p8 = scmp.ne.s32.totalorder %s1509_s2, %s1647_s10  ;;  %p1653_p10 = scmp.lt.s32.totalorder %s1647_s10, %s1647_s10 }
  0x1b   :  { %v1841_v35 = vadd.s32 128, %v1838_v32  ;;  %v36_v36 = vand.u32 15, %v1838_v32  ;;  %vm114_vm1 = vcmp.lt.s32.totalorder %v1838_v32, 17  ;;  %vm60_vm2 = vcmp.ge.s32.totalorder %v1838_v32, 16 }
  0x1c   :  { %112 = vrot.lane.b32.xlu0 %v108_v2, %s1678_s27  ;;  %vm127_vm3 = vcmp.lt.s32.totalorder %v1838_v32, 16  ;;  %vm2727_vm7 = vcmp.lt.s32.totalorder %v1838_v32, 15  ;;  %vm2726_vm8 = vcmp.lt.s32.totalorder %v1838_v32, 1  ;;  %vm172_vm11 = vcmp.lt.s32.totalorder %v1838_v32, 127  ;;  %p1654_p11 = por %p1653_p10, %p1652_p9 }
  0x1d   :  { %138 = vrot.lane.b32.xlu1 %v108_v2, %s1680_s0  ;;  %v43_v39 = vand.u32 15, %v1841_v35  ;;  %vm1845_vm0 = vcmp.ne.s32.totalorder %v36_v36, 0  ;;  %vm1874_vm6 = vcmp.ne.s32.totalorder %v36_v36, 15  ;;  %vm185_vm12 = vcmp.lt.s32.totalorder %v1838_v32, 113 }
  0x1e   :  { %vm1856_vm4 = vmand %vm60_vm2, %vm1845_vm0  ;;  %vm63_vm13 = vcmp.lt.s32.totalorder %v1841_v35, 240  ;;  %vm198_vm15 = vcmp.lt.s32.totalorder %v1838_v32, 112  ;;  %p1655_p12 = pnand %p1654_p11, %p1648_p8 }
  0x1f   :  { %vm1866_vm5 = vcmp.ne.s32.totalorder %v43_v39, 0  ;;  %vm1896_vm9 = vmand %vm60_vm2, %vm1874_vm6  ;;  %vm1902_vm10 = vcmp.ne.s32.totalorder %v43_v39, 15 }
  0x20   :  { %149 = vrot.lane.b32.xlu0 %v1756_v1, %s1681_s28  ;;  %vm1952_vm14 = vmand %vm63_vm13, %vm1866_vm5 }
  0x21   :  { %151 = vrot.lane.b32.xlu1 %v108_v2, %s1681_s28 }
  0x24   :  { %168 = vrot.lane.b32.xlu0 %v1756_v1, %s1682_s29 }
  0x25   :  { %170 = vrot.lane.b32.xlu1 %v108_v2, %s1682_s29 }
  0x28   :  { %181 = vrot.lane.b32.xlu0 %v1756_v1, %s1683_s30 }
  0x29   :  { %183 = vrot.lane.b32.xlu1 %v108_v2, %s1683_s30 }
  0x2c   :  { %194 = vrot.lane.b32.xlu0 %v1756_v1, %s1684_s4 }
  0x2d   :  { %196 = vrot.lane.b32.xlu1 %v108_v2, %s1684_s4 }
  0x30   :  { %207 = vrot.lane.b32.xlu0 %v1756_v1, %s1685_s5 }
  0x31   :  { %888 = vrot.lane.b32.xlu1 %v1781_v4, %s1678_s27 }
  0x34   :  { %890 = vrot.lane.b32.xlu0 %v886_v5, %s1678_s27 }
  0x35   :  { %900 = vrot.lane.b32.xlu1 %v1781_v4, %s1677_s26 }
  0x38   :  { %902 = vrot.lane.b32.xlu0 %v886_v5, %s1677_s26 }
  0x39   :  { %912 = vrot.lane.b32.xlu1 %v1781_v4, %s1680_s0 }
  0x3c   :  { %914 = vrot.lane.b32.xlu0 %v886_v5, %s1680_s0 }
  0x3d   :  { %924 = vrot.lane.b32.xlu1 %v1781_v4, %s1681_s28 }
  0x40   :  { %926 = vrot.lane.b32.xlu0 %v886_v5, %s1681_s28 }
  0x41   :  { %942 = vrot.lane.b32.xlu1 %v1781_v4, %s1682_s29 }
  0x44   :  { %944 = vrot.lane.b32.xlu0 %v886_v5, %s1682_s29 }
  0x45   :  { %954 = vrot.lane.b32.xlu1 %v1781_v4, %s1683_s30 }
  0x48   :  { %956 = vrot.lane.b32.xlu0 %v886_v5, %s1683_s30 }
  0x49   :  { %966 = vrot.lane.b32.xlu1 %v1781_v4, %s1684_s4 }
  0x4c   :  { %968 = vrot.lane.b32.xlu0 %v886_v5, %s1684_s4 }
  0x4d   :  { %209 = vrot.lane.b32.xlu1 %v108_v2, %s1685_s5 }
  0x50   :  { %978 = vrot.lane.b32.xlu0 %v1781_v4, %s1685_s5 }
  0x51   :  { %980 = vrot.lane.b32.xlu1 %v886_v5, %s1685_s5 }
  0x54   :  { %222 = vperm.xlu0 %1568, %v105_v7  }
  0x55   :  { %252 = vperm.xlu1 %1569, %v1815_v6  }
  0x58   :  { %236 = vperm.xlu0 %1568, %v1815_v6  }
  0x59   :  { %1571 = vset.pattern.permute.xlu1 %v1686_v8 }
  0x5a   :  { %284 = vperm.xlu1 %1571, %v1815_v6  }
  0x5c   :  { %1570 = vset.pattern.permute.xlu0 %v1687_v9 }
  0x5d   :  { %268 = vperm.xlu0 %1570, %v1815_v6  }
  0x5e   :  { %1572 = vset.pattern.permute.xlu1 %v1688_v10 }
  0x5f   :  { %308 = vperm.xlu1 %1572, %v1815_v6  }
  0x61   :  { %1573 = vset.pattern.permute.xlu0 %v1689_v11 }
  0x62   :  { %324 = vperm.xlu0 %1573, %v1815_v6  }
  0x63   :  { %1574 = vset.pattern.permute.xlu1 %v1690_v12 }
  0x64   :  { %340 = vperm.xlu1 %1574, %v1815_v6  }
  0x66   :  { %1576 = vset.pattern.permute.xlu0 %v1691_v13 }
  0x67   :  { %380 = vperm.xlu0 %1576, %v1815_v6  }
  0x68   :  { %1575 = vset.pattern.permute.xlu1 %v1692_v14 }
  0x69   :  { %356 = vperm.xlu1 %1575, %v1815_v6  }
  0x6b   :  { %1579 = vset.pattern.permute.xlu0 %v1693_v15 }
  0x6c   :  { %428 = vperm.xlu0 %1579, %v1815_v6  }
  0x6d   :  { %1577 = vset.pattern.permute.xlu1 %v1694_v16 }
  0x6e   :  { %396 = vperm.xlu1 %1577, %v1815_v6  }
  0x70   :  { %1582 = vset.pattern.permute.xlu0 %v1695_v17 }
  0x71   :  { %484 = vperm.xlu0 %1582, %v1815_v6  }
  0x72   :  { %1578 = vset.pattern.permute.xlu1 %v1696_v18 }
  0x73   :  { %412 = vperm.xlu1 %1578, %v1815_v6  }
  0x75   :  { %1585 = vset.pattern.permute.xlu0 %v1697_v19 }
  0x77   :  { %1580 = vset.pattern.permute.xlu1 %v1698_v20  ;;  %v162_v20 = vmul.f32 8.0, %v1756_v1 }
  0x78   :  { %452 = vperm.xlu1 %1580, %v1815_v6  }
  0x7c   :  { %1581 = vset.pattern.permute.xlu1 %v1699_v21 }
  0x7d   :  { %468 = vperm.xlu1 %1581, %v1815_v6  }
  0x81   :  { %1583 = vset.pattern.permute.xlu1 %v1700_v22 }
  0x82   :  { %500 = vperm.xlu1 %1583, %v1815_v6  }
  0x86   :  { %1584 = vset.pattern.permute.xlu1 %v1701_v23  ;;  %v111_v25 = vpop.permute.xlu0 %110 }
  0x87   :  { %v124_v24 = vpop.permute.xlu1 %123  ;;  %516 = vperm.xlu1 %1584, %v1815_v6  }
  0x8a   :  { %v137_v26 = vpop.permute.xlu0 %136 }
  0x8b   :  { %v126_v27 = vpop.permute.xlu1 %125  ;;  %1586 = vset.pattern.permute.xlu1 %v1702_v28 }
  0x8c   :  { %v129_v47 = vsel %vm127_vm3, %v126_v27, %v124_v24  ;;  %v128_v54 = vsel %vm127_vm3, %v124_v24, %v126_v27 }
  0x8d   :  { %v130_v53 = vsel %vm60_vm2, %v129_v47, 0.0  ;;  %v133_v2 = vmul.f32 -1.0, %v128_v54 }
  0x8e   :  { %v113_v31 = vpop.permute.xlu0 %112  ;;  %v132_v61 = vmul.f32 -1.0, %v130_v53 }
  0x8f   :  { %v139_v30 = vpop.permute.xlu1 %138  ;;  %v116_v42 = vsel %vm114_vm1, %v113_v31, %v111_v25  ;;  %v115_v46 = vsel %vm114_vm1, %v111_v25, %v113_v31 }
  0x90   :  { %v117_v49 = vsel %vm1856_vm4, %v116_v42, 0.0  ;;  %v118_v50 = vsel %vm1866_vm5, %v115_v46, 0.0  ;;  %v142_v56 = vsel %vm2727_vm7, %v139_v30, %v137_v26  ;;  %v141_v59 = vsel %vm2727_vm7, %v137_v26, %v139_v30 }
  0x91   :  { %v119_v57 = vmul.f32 -1.0, %v117_v49  ;;  %v120_v60 = vmul.f32 -1.0, %v118_v50  ;;  %v143_v3 = vsel %vm1896_vm9, %v142_v56, 0.0  ;;  %v144_v7 = vsel %vm1902_vm10, %v141_v59, 0.0 }
  0x92   :  { %v150_v34 = vpop.permute.xlu0 %149  ;;  %v145_v11 = vmul.f32 -1.0, %v143_v3  ;;  %v146_v15 = vmul.f32 -1.0, %v144_v7  ;;  %v164_v30 = vcombine.high %v162_v20, %v162_v20 }
  0x93   :  { %v152_v33 = vpop.permute.xlu1 %151  ;;  %v134_v8 = vadd.f32 %v132_v61, %v119_v57  ;;  %v135_v9 = vadd.f32 %v133_v2, %v120_v60 }
  0x94   :  { %v155_v62 = vsel %vm2726_vm8, %v152_v33, %v150_v34  ;;  %v154_v5 = vsel %vm2726_vm8, %v150_v34, %v152_v33 }
  0x95   :  { %v156_v10 = vsel %vm1845_vm0, %v155_v62, 0.0  ;;  %v157_v12 = vsel %vm1866_vm5, %v154_v5, 0.0  ;;  %v147_v16 = vadd.f32 %v145_v11, %v134_v8  ;;  %v148_v18 = vadd.f32 %v146_v15, %v135_v9 }
  0x96   :  { %v169_v38 = vpop.permute.xlu0 %168  ;;  %v158_v17 = vmul.f32 -1.0, %v156_v10  ;;  %v159_v19 = vmul.f32 -1.0, %v157_v12 }
  0x97   :  { %v171_v37 = vpop.permute.xlu1 %170 }
  0x98   :  { %v160_v25 = vadd.f32 %v158_v17, %v147_v16  ;;  %v173_v26 = vsel %vm172_vm11, %v169_v38, %v171_v37  ;;  %v174_v27 = vsel %vm172_vm11, %v171_v37, %v169_v38  ;;  %v161_v28 = vadd.f32 %v159_v19, %v148_v18 }
  0x99   :  { %v175_v37 = vsel %vm1874_vm6, %v173_v26, 0.0  ;;  %v176_v38 = vsel %vm1902_vm10, %v174_v27, 0.0 }
  0x9a   :  { %v1864_v44 = vpop.permute.xlu0 %181  ;;  %v166_v46 = vadd.f32 %v162_v20, %v160_v25  ;;  %v167_v53 = vadd.f32 %v164_v30, %v161_v28  ;;  %v177_v59 = vmul.f32 -1.0, %v175_v37  ;;  %v178_v60 = vmul.f32 -1.0, %v176_v38 }
  0x9b   :  { %v1862_v43 = vpop.permute.xlu1 %183 }
  0x9c   :  { %v186_v31 = vsel %vm185_vm12, %v1864_v44, %v1862_v43  ;;  %v187_v49 = vsel %vm185_vm12, %v1862_v43, %v1864_v44  ;;  %v179_v15 = vadd.f32 %v177_v59, %v166_v46 }
  0x9d   :  { %v188_v54 = vsel %vm1845_vm0, %v186_v31, 0.0  ;;  %v189_v2 = vsel %vm1952_vm14, %v187_v49, 0.0 }
  0x9e   :  { %v1885_v52 = vpop.permute.xlu0 %194  ;;  %v190_v8 = vmul.f32 -1.0, %v188_v54 }
  0x9f   :  { %v1883_v51 = vpop.permute.xlu1 %196 }
  0xa0   :  { %v199_v16 = vsel %vm198_vm15, %v1885_v52, %v1883_v51 }
  0xa1   :  { %v203_v28 = vmul.f32 -1.0, %v199_v16 }
  0xa2   :  { %v1910_v0 = vpop.permute.xlu0 %207 }
  0xa3   :  { %v889_v63 = vpop.permute.xlu1 %888 }
  0xa6   :  { %v891_v14 = vpop.permute.xlu0 %890 }
  0xa7   :  { %v901_v13 = vpop.permute.xlu1 %900  ;;  %v893_v23 = vsel %vm114_vm1, %v891_v14, %v889_v63  ;;  %v892_v61 = vsel %vm114_vm1, %v889_v63, %v891_v14  ;;  %v200_v63 = vsel %vm198_vm15, %v1883_v51, %v1885_v52  ;;  %v180_v51 = vadd.f32 %v178_v60, %v167_v53 }
  0xa8   :  { %v894_v33 = vsel %vm1856_vm4, %v893_v23, 0.0  ;;  %v895_v11 = vsel %vm1866_vm5, %v892_v61, 0.0  ;;  %v202_v20 = vsel %vm63_vm13, %v200_v63, 0.0  ;;  %v192_v52 = vadd.f32 %v190_v8, %v179_v15 }
  0xa9   :  { %v896_v56 = vmul.f32 -1.0, %v894_v33  ;;  %v897_v25 = vmul.f32 -1.0, %v895_v11  ;;  %v204_v30 = vmul.f32 -1.0, %v202_v20 }
  0xaa   :  { %v903_v22 = vpop.permute.xlu0 %902  ;;  %v205_v53 = vadd.f32 %v203_v28, %v192_v52 }
  0xab   :  { %v913_v21 = vpop.permute.xlu1 %912  ;;  %v905_v24 = vsel %vm127_vm3, %v903_v22, %v901_v13  ;;  %v904_v3 = vsel %vm127_vm3, %v901_v13, %v903_v22 }
  0xac   :  { %v906_v1 = vsel %vm60_vm2, %v905_v24, 0.0  ;;  %v909_v17 = vmul.f32 -1.0, %v904_v3  ;;  %v191_v24 = vmul.f32 -1.0, %v189_v2 }
  0xad   :  { %v908_v39 = vmul.f32 -1.0, %v906_v1  ;;  %v936_v1 = vmul.f32 8.0, %v1781_v4 }
  0xae   :  { %v915_v36 = vpop.permute.xlu0 %914  ;;  %v911_v31 = vadd.f32 %v909_v17, %v897_v25 }
  0xaf   :  { %v925_v34 = vpop.permute.xlu1 %924  ;;  %v917_v42 = vsel %vm2727_vm7, %v915_v36, %v913_v21  ;;  %v916_v62 = vsel %vm2727_vm7, %v913_v21, %v915_v36  ;;  %v910_v5 = vadd.f32 %v908_v39, %v896_v56  ;;  %vm2009_vm7 = vmand %vm63_vm13, %vm1902_vm10 }
  0xb0   :  { %v918_v50 = vsel %vm1896_vm9, %v917_v42, 0.0  ;;  %v919_v12 = vsel %vm1902_vm10, %v916_v62, 0.0  ;;  %v193_v42 = vadd.f32 %v191_v24, %v180_v51 }
  0xb1   :  { %v920_v57 = vmul.f32 -1.0, %v918_v50  ;;  %v921_v26 = vmul.f32 -1.0, %v919_v12 }
  0xb2   :  { %v927_v44 = vpop.permute.xlu0 %926  ;;  %v206_v54 = vadd.f32 %v204_v30, %v193_v42  ;;  %v1708_v42 = vmov 24  }
  0xb3   :  { %v943_v43 = vpop.permute.xlu1 %942  ;;  %v929_v7 = vsel %vm2726_vm8, %v927_v44, %v925_v34  ;;  %v928_v9 = vsel %vm2726_vm8, %v925_v34, %v927_v44  ;;  %v922_v13 = vadd.f32 %v920_v57, %v910_v5  ;;  %v923_v46 = vadd.f32 %v921_v26, %v911_v31 }
  0xb4   :  { %v930_v10 = vsel %vm1845_vm0, %v929_v7, 0.0  ;;  %v931_v21 = vsel %vm1866_vm5, %v928_v9, 0.0  ;;  %vm211_vm8 = vcmp.lt.s32.totalorder %v1838_v32, 111  ;;  %v938_v57 = vcombine.high %v936_v1, %v936_v1 }
  0xb5   :  { %v932_v14 = vmul.f32 -1.0, %v930_v10  ;;  %v933_v33 = vmul.f32 -1.0, %v931_v21 }
  0xb6   :  { %v945_v19 = vpop.permute.xlu0 %944 }
  0xb7   :  { %v955_v18 = vpop.permute.xlu1 %954  ;;  %v934_v22 = vadd.f32 %v932_v14, %v922_v13  ;;  %v946_v23 = vsel %vm172_vm11, %v943_v43, %v945_v19  ;;  %v935_v56 = vadd.f32 %v933_v33, %v923_v46  ;;  %v947_v61 = vsel %vm172_vm11, %v945_v19, %v943_v43 }
  0xb8   :  { %v948_v27 = vsel %vm1874_vm6, %v946_v23, 0.0  ;;  %v949_v11 = vsel %vm1902_vm10, %v947_v61, 0.0  ;;  %v1703_v33 = vmov 5   ;;  %v1714_v61 = vmov 17  }
  0xb9   :  { %v940_v37 = vadd.f32 %v936_v1, %v934_v22  ;;  %v950_v38 = vmul.f32 -1.0, %v948_v27  ;;  %v941_v17 = vadd.f32 %v938_v57, %v935_v56  ;;  %v951_v20 = vmul.f32 -1.0, %v949_v11 }
  0xba   :  { %v957_v36 = vpop.permute.xlu0 %956  ;;  %v1712_v56 = vmov 25  }
  0xbb   :  { %v967_v34 = vpop.permute.xlu1 %966  ;;  %v958_v39 = vsel %vm185_vm12, %v955_v18, %v957_v36  ;;  %v952_v62 = vadd.f32 %v950_v38, %v940_v37  ;;  %v959_v3 = vsel %vm185_vm12, %v957_v36, %v955_v18  ;;  %v953_v51 = vadd.f32 %v951_v20, %v941_v17 }
  0xbc   :  { %v960_v49 = vsel %vm1845_vm0, %v958_v39, 0.0  ;;  %v961_v18 = vsel %vm1952_vm14, %v959_v3, 0.0  ;;  %v1705_v36 = vmov 32   ;;  %v1706_v37 = vmov 14  }
  0xbd   :  { %v962_v50 = vmul.f32 -1.0, %v960_v49  ;;  %v963_v25 = vmul.f32 -1.0, %v961_v18  ;;  %v1707_v39 = vmov 23   ;;  %v1709_v49 = vmov 6  }
  0xbe   :  { %v969_v60 = vpop.permute.xlu0 %968  ;;  %v1716_v3 = vmov 7  }
  0xbf   :  { %v210_v59 = vpop.permute.xlu1 %209  ;;  %v970_v43 = vsel %vm198_vm15, %v967_v34, %v969_v60  ;;  %v964_v8 = vadd.f32 %v962_v50, %v952_v62  ;;  %v971_v15 = vsel %vm198_vm15, %v969_v60, %v967_v34  ;;  %v965_v1 = vadd.f32 %v963_v25, %v953_v51 }
  0xc0   :  { %v212_v44 = vsel %vm211_vm8, %v1910_v0, %v210_v59  ;;  %v213_v2 = vsel %vm211_vm8, %v210_v59, %v1910_v0  ;;  %v974_v10 = vmul.f32 -1.0, %v970_v43  ;;  %v973_v24 = vsel %vm63_vm13, %v971_v15, 0.0 }
  0xc1   :  { %v214_v5 = vsel %vm1874_vm6, %v212_v44, 0.0  ;;  %v215_v7 = vsel %vm2009_vm7, %v213_v2, 0.0  ;;  %v975_v52 = vmul.f32 -1.0, %v973_v24  ;;  %v1704_v34 = vmov 31  }
  0xc2   :  { %v216_v63 = vmul.f32 -1.0, %v214_v5  ;;  %v217_v9 = vmul.f32 -1.0, %v215_v7  ;;  %v979_v12 = vpop.permute.xlu0 %978  ;;  %v976_v21 = vadd.f32 %v974_v10, %v964_v8  ;;  %v1710_v50 = vmov 16  }
  0xc3   :  { %v981_v0 = vpop.permute.xlu1 %980  ;;  %v977_v30 = vadd.f32 %v975_v52, %v965_v1  ;;  %v1713_v59 = vmov 33   ;;  %v1715_v44 = vmov 26   ;;  %v1717_v43 = vmov 35  }
  0xc4   :  { %v2031_v13 = vadd.f32 %v216_v63, %v205_v53  ;;  %v2033_v14 = vadd.f32 %v217_v9, %v206_v54  ;;  %v982_v16 = vsel %vm211_vm8, %v979_v12, %v981_v0  ;;  %v983_v22 = vsel %vm211_vm8, %v981_v0, %v979_v12 }
  0xc5   :  { %v984_v19 = vsel %vm1874_vm6, %v982_v16, 0.0  ;;  %v985_v27 = vsel %vm2009_vm7, %v983_v22, 0.0  ;;  %v1711_v54 = vmov 15   ;;  %v1718_v8 = vmov 34  }
  0xc6   :  { %v986_v23 = vmul.f32 -1.0, %v984_v19  ;;  %226 = vrot.lane.b32.xlu1 %v2031_v13, %s1678_s27  ;;  %301 = vrot.lane.b32.xlu0 %v2033_v14, %s1677_s26  ;;  %v987_v28 = vmul.f32 -1.0, %v985_v27  ;;  %v1719_v12 = vmov 8   ;;  %v240_v19 = vshrl.u32 %v29_v29, 7 }
  0xc8   :  { %v2051_v26 = vadd.f32 %v986_v23, %v976_v21  ;;  %v2063_v31 = vadd.f32 %v987_v28, %v977_v30  ;;  %v2172_v22 = vsub.s32 0, %v240_v19  ;;  %v2174_v23 = vsub.s32 1, %v240_v19 }
  0xc9   :  { %v2180_v27 = vsub.s32 2, %v240_v19 }
  0xca   :  { %228 = vrot.lane.b32.xlu1 %v2033_v14, %s1678_s27  ;;  %990 = vrot.lane.b32.xlu0 %v2051_v26, %s1678_s27 }
  0xce   :  { %299 = vrot.lane.b32.xlu1 %v2031_v13, %s1677_s26  ;;  %371 = vrot.lane.b32.xlu0 %v2031_v13, %s1680_s0 }
  0xd2   :  { %992 = vrot.lane.b32.xlu1 %v2063_v31, %s1678_s27  ;;  %1046 = vrot.lane.b32.xlu0 %v2051_v26, %s1677_s26 }
  0xd3   :  { %v2131_v2 = vpop.permute.xlu0 %222 }
  0xd4   :  { %v2099_v38 = vpop.permute.xlu1 %252 }
  0xd6   :  { %373 = vrot.lane.b32.xlu1 %v2033_v14, %s1680_s0  ;;  %1104 = vrot.lane.b32.xlu0 %v2063_v31, %s1680_s0 }
  0xd7   :  { %v2137_v7 = vpop.permute.xlu0 %236 }
  0xd9   :  { %v2105_v46 = vpop.permute.xlu1 %284 }
  0xda   :  { %1048 = vrot.lane.b32.xlu1 %v2063_v31, %s1677_s26  ;;  %443 = vrot.lane.b32.xlu0 %v2031_v13, %s1681_s28 }
  0xdc   :  { %v2145_v9 = vpop.permute.xlu0 %268 }
  0xde   :  { %1102 = vrot.lane.b32.xlu1 %v2051_v26, %s1680_s0  ;;  %1158 = vrot.lane.b32.xlu0 %v2051_v26, %s1681_s28  ;;  %v2109_v53 = vpop.permute.xlu1 %308 }
  0xe1   :  { %v2151_v11 = vpop.permute.xlu0 %324 }
  0xe2   :  { %445 = vrot.lane.b32.xlu1 %v2033_v14, %s1681_s28  ;;  %532 = vperm.xlu0 %1585, %v1815_v6  }
  0xe3   :  { %v2116_v57 = vpop.permute.xlu1 %340 }
  0xe6   :  { %548 = vperm.xlu1 %1586, %v1815_v6   ;;  %1588 = vset.pattern.permute.xlu0 %v1703_v33  ;;  %v2156_v15 = vpop.permute.xlu0 %380  ;;  %v2191_v33 = vsub.s32 3, %v240_v19 }
  0xe7   :  { %588 = vperm.xlu0 %1588, %v1815_v6  }
  0xe8   :  { %v2121_v60 = vpop.permute.xlu1 %356  ;;  %v1257_v58 = vrot.slane %v2063_v31, %v2191_v33 }
  0xea   :  { %1160 = vrot.lane.b32.xlu1 %v2063_v31, %s1681_s28 }
  0xeb   :  { %581 = vrot.lane.b32.xlu0 %v2033_v14, %s1682_s29  ;;  %1587 = vset.pattern.permute.xlu1 %v1704_v34  ;;  %v2163_v17 = vpop.permute.xlu0 %428 }
  0xec   :  { %1591 = vset.pattern.permute.xlu0 %v1705_v36 }
  0xed   :  { %v2129_v62 = vpop.permute.xlu1 %396 }
  0xee   :  { %564 = vperm.xlu1 %1587, %v1815_v6  }
  0xef   :  { %1264 = vrot.lane.b32.xlu0 %v2063_v31, %s1682_s29 }
  0xf0   :  { %v2168_v20 = vpop.permute.xlu0 %484 }
  0xf2   :  { %1589 = vset.pattern.permute.xlu1 %v1706_v37  ;;  %v2135_v5 = vpop.permute.xlu1 %412 }
  0xf3   :  { %604 = vperm.xlu1 %1589, %v1815_v6   ;;  %636 = vperm.xlu0 %1591, %v1815_v6  }
  0xf7   :  { %579 = vrot.lane.b32.xlu1 %v2031_v13, %s1682_s29  ;;  %651 = vrot.lane.b32.xlu0 %v2031_v13, %s1683_s30  ;;  %v2141_v63 = vpop.permute.xlu1 %452 }
  0xf8   :  { %1590 = vset.pattern.permute.xlu1 %v1707_v39  ;;  %1594 = vset.pattern.permute.xlu0 %v1708_v42 }
  0xfb   :  { %1262 = vrot.lane.b32.xlu1 %v2051_v26, %s1682_s29  ;;  %1318 = vrot.lane.b32.xlu0 %v2051_v26, %s1683_s30 }
  0xfc   :  { %v2149_v10 = vpop.permute.xlu1 %468 }
  0xff   :  { %620 = vperm.xlu1 %1590, %v1815_v6   ;;  %692 = vperm.xlu0 %1594, %v1815_v6  }
 0x101   :  { %v2154_v0 = vpop.permute.xlu1 %500 }
 0x103   :  { %1592 = vset.pattern.permute.xlu1 %v1709_v49  ;;  %1597 = vset.pattern.permute.xlu0 %v1710_v50 }
 0x104   :  { %660 = vperm.xlu1 %1592, %v1815_v6   ;;  %748 = vperm.xlu0 %1597, %v1815_v6  }
 0x106   :  { %v2161_v16 = vpop.permute.xlu1 %516 }
 0x108   :  { %1593 = vset.pattern.permute.xlu1 %v1711_v54  ;;  %1374 = vrot.lane.b32.xlu0 %v2051_v26, %s1684_s4 }
 0x109   :  { %676 = vperm.xlu1 %1593, %v1815_v6   ;;  %1598 = vset.pattern.permute.xlu0 %v1712_v56 }
 0x10c   :  { %764 = vperm.xlu0 %1598, %v1815_v6  }
 0x10d   :  { %653 = vrot.lane.b32.xlu1 %v2033_v14, %s1683_s30 }
 0x10e   :  { %1595 = vset.pattern.permute.xlu1 %v1713_v59 }
 0x110   :  { %1601 = vset.pattern.permute.xlu0 %v1714_v61 }
 0x111   :  { %1320 = vrot.lane.b32.xlu1 %v2063_v31, %s1683_s30  ;;  %820 = vperm.xlu0 %1601, %v1815_v6  }
 0x115   :  { %708 = vperm.xlu1 %1595, %v1815_v6   ;;  %1430 = vrot.lane.b32.xlu0 %v2051_v26, %s1685_s5 }
 0x116   :  { %1602 = vset.pattern.permute.xlu0 %v1715_v44 }
 0x119   :  { %1596 = vset.pattern.permute.xlu1 %v1716_v3  ;;  %836 = vperm.xlu0 %1602, %v1815_v6  }
 0x11a   :  { %732 = vperm.xlu1 %1596, %v1815_v6  }
 0x11d   :  { %1604 = vset.pattern.permute.xlu0 %v1717_v43 }
 0x11e   :  { %723 = vrot.lane.b32.xlu1 %v2031_v13, %s1684_s4 }
 0x11f   :  { %1599 = vset.pattern.permute.xlu1 %v1718_v8 }
 0x122   :  { %725 = vrot.lane.b32.xlu1 %v2033_v14, %s1684_s4 }
 0x126   :  { %1376 = vrot.lane.b32.xlu1 %v2063_v31, %s1684_s4 }
 0x12a   :  { %780 = vperm.xlu1 %1599, %v1815_v6  }
 0x12e   :  { %1600 = vset.pattern.permute.xlu1 %v1719_v12 }
 0x12f   :  { %804 = vperm.xlu1 %1600, %v1815_v6  }
 0x133   :  { %795 = vrot.lane.b32.xlu1 %v2031_v13, %s1685_s5 }
 0x134   :  { %1603 = vset.pattern.permute.xlu1 %v1717_v43 }
 0x137   :  { %797 = vrot.lane.b32.xlu1 %v2033_v14, %s1685_s5 }
 0x138   :  { %v227_v18 = vpop.permute.xlu1 %226  ;;  %v302_v37 = vpop.permute.xlu0 %301 }
 0x13b   :  { %1432 = vrot.lane.b32.xlu1 %v2063_v31, %s1685_s5 }
 0x13c   :  { %v229_v21 = vpop.permute.xlu1 %228 }
 0x13d   :  { %v230_v24 = vsel %vm114_vm1, %v227_v18, %v229_v21  ;;  %v231_v25 = vsel %vm114_vm1, %v229_v21, %v227_v18 }
 0x13e   :  { %v232_v29 = vsel %vm1856_vm4, %v231_v25, 0.0  ;;  %v233_v51 = vsel %vm1866_vm5, %v230_v24, 0.0 }
 0x13f   :  { %v242_v52 = vrot.slane %v232_v29, %v2172_v22  ;;  %v246_v1 = vrot.slane %v233_v51, %v2172_v22  ;;  %v258_v28 = vrot.slane %v232_v29, %v2174_v23  ;;  %v262_v30 = vrot.slane %v233_v51, %v2174_v23  ;;  %852 = vperm.xlu1 %1603, %v1815_v6  }
 0x140   :  { %v274_v34 = vrot.slane %v232_v29, %v2180_v27  ;;  %v300_v36 = vpop.permute.xlu1 %299  ;;  %v278_v49 = vrot.slane %v233_v51, %v2180_v27  ;;  %v290_v56 = vrot.slane %v232_v29, %v2191_v33  ;;  %v294_v6 = vrot.slane %v233_v51, %v2191_v33 }
 0x141   :  { %v247_v39 = vmul.f32 %v242_v52, %v2137_v7  ;;  %v248_v42 = vmul.f32 %v246_v1, %v2137_v7  ;;  %v263_v50 = vmul.f32 %v258_v28, %v2099_v38  ;;  %v264_v54 = vmul.f32 %v262_v30, %v2099_v38  ;;  %v991_v28 = vpop.permute.xlu0 %990 }
 0x142   :  { %v2205_v44 = vsel %vm127_vm3, %v300_v36, %v302_v37  ;;  %v304_v3 = vsel %vm127_vm3, %v302_v37, %v300_v36  ;;  %v279_v43 = vmul.f32 %v274_v34, %v2145_v9  ;;  %v280_v21 = vmul.f32 %v278_v49, %v2145_v9 }
 0x143   :  { %v249_v59 = vadd.f32 %v247_v39, %v2131_v2  ;;  %v250_v61 = vadd.f32 %v248_v42, %v2131_v2  ;;  %v305_v8 = vsel %vm60_vm2, %v304_v3, 0.0  ;;  %v318_v12 = vrot.slane %v2205_v44, %v2172_v22 }
 0x144   :  { %v314_v24 = vrot.slane %v305_v8, %v2172_v22  ;;  %v993_v25 = vpop.permute.xlu1 %992  ;;  %v295_v29 = vmul.f32 %v290_v56, %v2105_v46  ;;  %v296_v1 = vmul.f32 %v294_v6, %v2105_v46  ;;  %v330_v30 = vrot.slane %v305_v8, %v2174_v23 }
 0x145   :  { %v265_v18 = vadd.f32 %v263_v50, %v249_v59  ;;  %v266_v19 = vadd.f32 %v264_v54, %v250_v61  ;;  %v320_v36 = vmul.f32 %v318_v12, %v2109_v53  ;;  %v334_v37 = vrot.slane %v2205_v44, %v2174_v23 }
 0x146   :  { %v319_v34 = vmul.f32 %v314_v24, %v2109_v53  ;;  %v994_v39 = vsel %vm114_vm1, %v991_v28, %v993_v25  ;;  %v995_v50 = vsel %vm114_vm1, %v993_v25, %v991_v28  ;;  %v346_v56 = vrot.slane %v305_v8, %v2180_v27 }
 0x147   :  { %v281_v51 = vadd.f32 %v279_v43, %v265_v18  ;;  %v282_v52 = vadd.f32 %v280_v21, %v266_v19  ;;  %v997_v54 = vsel %vm1866_vm5, %v994_v39, 0.0  ;;  %v350_v6 = vrot.slane %v2205_v44, %v2180_v27 }
 0x148   :  { %v996_v59 = vsel %vm1856_vm4, %v995_v50, 0.0  ;;  %v1005_v61 = vrot.slane %v997_v54, %v2172_v22  ;;  %v335_v12 = vmul.f32 %v330_v30, %v2151_v11  ;;  %v336_v19 = vmul.f32 %v334_v37, %v2151_v11  ;;  %v372_v30 = vpop.permute.xlu0 %371 }
 0x149   :  { %v297_v42 = vadd.f32 %v295_v29, %v281_v51  ;;  %v298_v49 = vadd.f32 %v296_v1, %v282_v52  ;;  %v1001_v18 = vrot.slane %v996_v59, %v2172_v22  ;;  %v1013_v24 = vrot.slane %v996_v59, %v2174_v23  ;;  %v374_v29 = vpop.permute.xlu1 %373 }
 0x14a   :  { %v1007_v21 = vmul.f32 %v1005_v61, %v2137_v7  ;;  %v1017_v25 = vrot.slane %v997_v54, %v2174_v23  ;;  %v1029_v52 = vrot.slane %v997_v54, %v2180_v27  ;;  %v352_v28 = vmul.f32 %v350_v6, %v2116_v57 }
 0x14b   :  { %v321_v3 = vadd.f32 %v319_v34, %v297_v42  ;;  %v322_v43 = vadd.f32 %v320_v36, %v298_v49  ;;  %v1006_v41 = vmul.f32 %v1001_v18, %v2137_v7  ;;  %v351_v37 = vmul.f32 %v346_v56, %v2116_v57 }
 0x14c   :  { %v1009_v34 = vadd.f32 %v1007_v21, %v2131_v2  ;;  %v1019_v36 = vmul.f32 %v1017_v25, %v2099_v38  ;;  %v362_v39 = vrot.slane %v305_v8, %v2191_v33  ;;  %v366_v42 = vrot.slane %v2205_v44, %v2191_v33 }
 0x14d   :  { %v337_v51 = vadd.f32 %v335_v12, %v321_v3  ;;  %v338_v1 = vadd.f32 %v336_v19, %v322_v43  ;;  %v1008_v49 = vadd.f32 %v1006_v41, %v2131_v2  ;;  %v1018_v7 = vmul.f32 %v1013_v24, %v2099_v38  ;;  %v1049_v38 = vpop.permute.xlu1 %1048 }
 0x14e   :  { %v1021_v50 = vadd.f32 %v1019_v36, %v1009_v34  ;;  %v1025_v61 = vrot.slane %v996_v59, %v2180_v27  ;;  %vm2744_vm1 = vcmp.lt.s32.totalorder %v1838_v32, 15  ;;  %v1031_v43 = vmul.f32 %v1029_v52, %v2145_v9 }
 0x14f   :  { %v376_v6 = vsel %vm2744_vm1, %v374_v29, %v372_v30  ;;  %v353_v3 = vadd.f32 %v351_v37, %v337_v51  ;;  %vm2745_vm4 = vmmov %vm2744_vm1  ;;  %v354_v8 = vadd.f32 %v352_v28, %v338_v1  ;;  %v1020_v12 = vadd.f32 %v1018_v7, %v1008_v49  ;;  %v1047_v51 = vpop.permute.xlu0 %1046 }
 0x150   :  { %v375_v56 = vsel %vm2745_vm4, %v372_v30, %v374_v29  ;;  %v1041_v44 = vrot.slane %v997_v54, %v2191_v33  ;;  %v2261_v2 = vsel %vm1896_vm9, %v376_v6, 0.0  ;;  %v367_v18 = vmul.f32 %v362_v39, %v2121_v60 }
 0x151   :  { %v1037_v19 = vrot.slane %v996_v59, %v2191_v33  ;;  %v368_v21 = vmul.f32 %v366_v42, %v2121_v60  ;;  %v1030_v24 = vmul.f32 %v1025_v61, %v2145_v9  ;;  %v1033_v25 = vadd.f32 %v1031_v43, %v1021_v50  ;;  %v1103_v49 = vpop.permute.xlu1 %1102 }
 0x152   :  { %v2269_v29 = vsel %vm1902_vm10, %v375_v56, 0.0  ;;  %v386_v54 = vrot.slane %v2261_v2, %v2172_v22  ;;  %v369_v41 = vadd.f32 %v367_v18, %v353_v3  ;;  %v1043_v28 = vmul.f32 %v1041_v44, %v2105_v46 }
 0x153   :  { %v370_v52 = vadd.f32 %v368_v21, %v354_v8  ;;  %v1032_v1 = vadd.f32 %v1030_v24, %v1020_v12  ;;  %v1042_v59 = vmul.f32 %v1037_v19, %v2105_v46  ;;  %v390_v30 = vrot.slane %v2269_v29, %v2172_v22  ;;  %v1105_v3 = vpop.permute.xlu0 %1104 }
 0x154   :  { %v402_v9 = vrot.slane %v2261_v2, %v2174_v23  ;;  %v1050_v34 = vsel %vm127_vm3, %v1047_v51, %v1049_v38  ;;  %v1045_v36 = vadd.f32 %v1043_v28, %v1033_v25  ;;  %v1051_v37 = vsel %vm127_vm3, %v1049_v38, %v1047_v51  ;;  %vm2747_vm3 = vmmov %vm2744_vm1 }
 0x155   :  { %v1061_v39 = vrot.slane %v1050_v34, %v2172_v22  ;;  %v1073_v42 = vrot.slane %v1050_v34, %v2174_v23  ;;  %v391_v46 = vmul.f32 %v386_v54, %v2156_v15  ;;  %v406_v7 = vrot.slane %v2269_v29, %v2174_v23 }
 0x156   :  { %v418_v50 = vrot.slane %v2261_v2, %v2180_v27  ;;  %v1052_v61 = vsel %vm60_vm2, %v1051_v37, 0.0  ;;  %v1044_v6 = vadd.f32 %v1042_v59, %v1032_v1  ;;  %v392_v12 = vmul.f32 %v390_v30, %v2156_v15  ;;  %vm2746_vm2 = vmmov %vm2744_vm1 }
 0x157   :  { %v1057_v43 = vrot.slane %v1052_v61, %v2172_v22  ;;  %v1063_v56 = vmul.f32 %v1061_v39, %v2109_v53  ;;  %v1069_v8 = vrot.slane %v1052_v61, %v2174_v23  ;;  %v393_v44 = vadd.f32 %v391_v46, %v369_v41 }
 0x158   :  { %v422_v38 = vrot.slane %v2269_v29, %v2180_v27  ;;  %v1085_v18 = vrot.slane %v1050_v34, %v2180_v27  ;;  %v1075_v24 = vmul.f32 %v1073_v42, %v2151_v11  ;;  %v1081_v25 = vrot.slane %v1052_v61, %v2180_v27 }
 0x159   :  { %v1062_v19 = vmul.f32 %v1057_v43, %v2109_v53  ;;  %v1065_v21 = vadd.f32 %v1063_v56, %v1045_v36  ;;  %v407_v51 = vmul.f32 %v402_v9, %v2129_v62  ;;  %v408_v54 = vmul.f32 %v406_v7, %v2129_v62  ;;  %v446_v53 = vpop.permute.xlu1 %445 }
 0x15a   :  { %v1074_v1 = vmul.f32 %v1069_v8, %v2151_v11  ;;  %v1093_v41 = vrot.slane %v1052_v61, %v2191_v33  ;;  %v1087_v30 = vmul.f32 %v1085_v18, %v2116_v57  ;;  %v1097_v37 = vrot.slane %v1050_v34, %v2191_v33  ;;  %v444_v61 = vpop.permute.xlu0 %443 }
 0x15b   :  { %v1064_v28 = vadd.f32 %v1062_v19, %v1044_v6  ;;  %v1077_v59 = vadd.f32 %v1075_v24, %v1065_v21  ;;  %v394_v36 = vadd.f32 %v392_v12, %v370_v52  ;;  %v409_v39 = vadd.f32 %v407_v51, %v393_v44 }
 0x15c   :  { %v1106_v42 = vsel %vm2746_vm2, %v1103_v49, %v1105_v3  ;;  %v1107_v9 = vsel %vm2747_vm3, %v1105_v3, %v1103_v49  ;;  %v1086_v11 = vmul.f32 %v1081_v25, %v2116_v57  ;;  %v1098_v43 = vmul.f32 %v1093_v41, %v2121_v60 }
 0x15d   :  { %v1076_v46 = vadd.f32 %v1074_v1, %v1064_v28  ;;  %v1089_v7 = vadd.f32 %v1087_v30, %v1077_v59  ;;  %v1108_v6 = vsel %vm1896_vm9, %v1107_v9, 0.0  ;;  %v1109_v52 = vsel %vm1902_vm10, %v1106_v42, 0.0 }
 0x15e   :  { %v1113_v34 = vrot.slane %v1108_v6, %v2172_v22  ;;  %vm2748_vm1 = vcmp.lt.s32.totalorder %v1838_v32, 1  ;;  %v1099_v49 = vmul.f32 %v1097_v37, %v2121_v60  ;;  %v1117_v57 = vrot.slane %v1109_v52, %v2172_v22  ;;  %v1159_v42 = vpop.permute.xlu0 %1158 }
 0x15f   :  { %v447_v56 = vsel %vm2748_vm1, %v444_v61, %v446_v53  ;;  %v1088_v8 = vadd.f32 %v1086_v11, %v1076_v46  ;;  %vm2749_vm4 = vmmov %vm2748_vm1  ;;  %v410_v55 = vadd.f32 %v408_v54, %v394_v36  ;;  %v423_v12 = vmul.f32 %v418_v50, %v2135_v5 }
 0x160   :  { %v448_v3 = vsel %vm2749_vm4, %v446_v53, %v444_v61  ;;  %v424_v44 = vmul.f32 %v422_v38, %v2135_v5  ;;  %v434_v18 = vrot.slane %v2261_v2, %v2191_v33  ;;  %v1101_v21 = vadd.f32 %v1099_v49, %v1089_v7  ;;  %vm2750_vm9 = vmmov %vm2748_vm1 }
 0x161   :  { %v1100_v19 = vadd.f32 %v1098_v43, %v1088_v8  ;;  %v1118_v24 = vmul.f32 %v1113_v34, %v2156_v15  ;;  %v1125_v25 = vrot.slane %v1108_v6, %v2174_v23  ;;  %v425_v60 = vadd.f32 %v423_v12, %v409_v39  ;;  %vm2751_vm2 = vmmov %vm2748_vm1 }
 0x162   :  { %v438_v51 = vrot.slane %v2269_v29, %v2191_v33  ;;  %v2335_v54 = vsel %vm1845_vm0, %v448_v3, 0.0  ;;  %v2339_v50 = vsel %vm1866_vm5, %v447_v56, 0.0  ;;  %v1119_v2 = vmul.f32 %v1117_v57, %v2156_v15 }
 0x163   :  { %v1120_v1 = vadd.f32 %v1118_v24, %v1100_v19  ;;  %v1129_v41 = vrot.slane %v1109_v52, %v2174_v23  ;;  %v426_v28 = vadd.f32 %v424_v44, %v410_v55  ;;  %v439_v59 = vmul.f32 %v434_v18, %v2163_v17  ;;  %v2364_v55 = vpop.permute.xlu0 %532 }
 0x164   :  { %v458_v29 = vrot.slane %v2335_v54, %v2172_v22  ;;  %v462_v30 = vrot.slane %v2339_v50, %v2172_v22  ;;  %v1121_v37 = vadd.f32 %v1119_v2, %v1101_v21  ;;  %v1130_v53 = vmul.f32 %v1125_v25, %v2129_v62 }
 0x165   :  { %v2341_v38 = vpop.permute.xlu1 %548  ;;  %v1137_v36 = vrot.slane %v1108_v6, %v2180_v27  ;;  %v440_v39 = vmul.f32 %v438_v51, %v2163_v17  ;;  %v441_v15 = vadd.f32 %v439_v59, %v425_v60  ;;  %v1131_v46 = vmul.f32 %v1129_v41, %v2129_v62 }
 0x166   :  { %v1132_v11 = vadd.f32 %v1130_v53, %v1120_v1  ;;  %v1141_v7 = vrot.slane %v1109_v52, %v2180_v27  ;;  %v1149_v61 = vrot.slane %v1108_v6, %v2191_v33  ;;  %v1153_v34 = vrot.slane %v1109_v52, %v2191_v33 }
 0x167   :  { %v442_v43 = vadd.f32 %v440_v39, %v426_v28  ;;  %v463_v56 = vmul.f32 %v458_v29, %v2141_v63  ;;  %v464_v8 = vmul.f32 %v462_v30, %v2141_v63  ;;  %v1133_v49 = vadd.f32 %v1131_v46, %v1121_v37  ;;  %v2390_v39 = vpop.permute.xlu0 %588 }
 0x168   :  { %v1142_v57 = vmul.f32 %v1137_v36, %v2135_v5  ;;  %v474_v3 = vrot.slane %v2335_v54, %v2174_v23  ;;  %v478_v62 = vrot.slane %v2339_v50, %v2174_v23  ;;  %v1143_v6 = vmul.f32 %v1141_v7, %v2135_v5 }
 0x169   :  { %v1161_v9 = vpop.permute.xlu1 %1160  ;;  %v1154_v44 = vmul.f32 %v1149_v61, %v2163_v17  ;;  %v1155_v18 = vmul.f32 %v1153_v34, %v2163_v17  ;;  %v465_v19 = vadd.f32 %v463_v56, %v441_v15  ;;  %v466_v21 = vadd.f32 %v464_v8, %v442_v43 }
 0x16a   :  { %v1144_v52 = vadd.f32 %v1142_v57, %v1132_v11  ;;  %v490_v24 = vrot.slane %v2335_v54, %v2180_v27  ;;  %v1145_v25 = vadd.f32 %v1143_v6, %v1133_v49  ;;  %v479_v60 = vmul.f32 %v474_v3, %v2149_v10 }
 0x16b   :  { %v1162_v51 = vsel %vm2750_vm9, %v1159_v42, %v1161_v9  ;;  %v1163_v2 = vsel %vm2751_vm2, %v1161_v9, %v1159_v42  ;;  %v480_v5 = vmul.f32 %v478_v62, %v2149_v10  ;;  %v494_v1 = vrot.slane %v2339_v50, %v2180_v27 }
 0x16c   :  { %v1164_v17 = vsel %vm1845_vm0, %v1163_v2, 0.0  ;;  %v1165_v41 = vsel %vm1866_vm5, %v1162_v51, 0.0  ;;  %v1156_v28 = vadd.f32 %v1154_v44, %v1144_v52  ;;  %v481_v53 = vadd.f32 %v479_v60, %v465_v19 }
 0x16d   :  { %v2366_v12 = vpop.permute.xlu1 %564  ;;  %v1169_v59 = vrot.slane %v1164_v17, %v2172_v22  ;;  %v1173_v29 = vrot.slane %v1165_v41, %v2172_v22  ;;  %v1181_v30 = vrot.slane %v1164_v17, %v2174_v23  ;;  %v482_v36 = vadd.f32 %v480_v5, %v466_v21 }
 0x16e   :  { %v1185_v15 = vrot.slane %v1165_v41, %v2174_v23  ;;  %v1193_v42 = vrot.slane %v1164_v17, %v2180_v27  ;;  %v1157_v9 = vadd.f32 %v1155_v18, %v1145_v25  ;;  %v1197_v11 = vrot.slane %v1165_v41, %v2180_v27 }
 0x16f   :  { %v1174_v45 = vmul.f32 %v1169_v59, %v2141_v63  ;;  %v1175_v46 = vmul.f32 %v1173_v29, %v2141_v63  ;;  %v495_v7 = vmul.f32 %v490_v24, %v2168_v20  ;;  %v496_v61 = vmul.f32 %v494_v1, %v2168_v20 }
 0x170   :  { %v506_v43 = vrot.slane %v2335_v54, %v2191_v33  ;;  %v510_v34 = vrot.slane %v2339_v50, %v2191_v33  ;;  %v1186_v49 = vmul.f32 %v1181_v30, %v2149_v10  ;;  %v1187_v57 = vmul.f32 %v1185_v15, %v2149_v10  ;;  %v582_v50 = vpop.permute.xlu0 %581 }
 0x171   :  { %v1176_v56 = vadd.f32 %v1174_v45, %v1156_v28  ;;  %v1177_v8 = vadd.f32 %v1175_v46, %v1157_v9  ;;  %v497_v63 = vadd.f32 %v495_v7, %v481_v53  ;;  %v498_v62 = vadd.f32 %v496_v61, %v482_v36 }
 0x172   :  { %v2388_v37 = vpop.permute.xlu1 %604  ;;  %v1198_v6 = vmul.f32 %v1193_v42, %v2168_v20  ;;  %v1205_v52 = vrot.slane %v1164_v17, %v2191_v33  ;;  %v1199_v54 = vmul.f32 %v1197_v11, %v2168_v20  ;;  %v1209_v19 = vrot.slane %v1165_v41, %v2191_v33 }
 0x173   :  { %v1188_v44 = vadd.f32 %v1186_v49, %v1176_v56  ;;  %v1189_v18 = vadd.f32 %v1187_v57, %v1177_v8  ;;  %v511_v21 = vmul.f32 %v506_v43, %v2154_v0  ;;  %v512_v24 = vmul.f32 %v510_v34, %v2154_v0 }
 0x174   :  { %v522_v51 = vrot.slane %v2031_v13, %v2172_v22  ;;  %v526_v2 = vrot.slane %v2033_v14, %v2172_v22  ;;  %v538_v5 = vrot.slane %v2031_v13, %v2174_v23  ;;  %v1210_v20 = vmul.f32 %v1205_v52, %v2154_v0  ;;  %v1265_v11 = vpop.permute.xlu0 %1264 }
 0x175   :  { %v1200_v25 = vadd.f32 %v1198_v6, %v1188_v44  ;;  %v1201_v10 = vadd.f32 %v1199_v54, %v1189_v18  ;;  %v513_v1 = vadd.f32 %v511_v21, %v497_v63  ;;  %v514_v17 = vadd.f32 %v512_v24, %v498_v62 }
 0x176   :  { %v580_v3 = vpop.permute.xlu1 %579  ;;  %v542_v41 = vrot.slane %v2033_v14, %v2174_v23  ;;  %v1211_v28 = vmul.f32 %v1209_v19, %v2154_v0  ;;  %v1217_v59 = vrot.slane %v2051_v26, %v2172_v22  ;;  %v1221_v29 = vrot.slane %v2063_v31, %v2172_v22 }
 0x177   :  { %v554_v30 = vrot.slane %v2031_v13, %v2180_v27  ;;  %v1212_v53 = vadd.f32 %v1210_v20, %v1200_v25  ;;  %v527_v36 = vmul.f32 %v522_v51, %v2161_v16  ;;  %v528_v15 = vmul.f32 %v526_v2, %v2161_v16 }
 0x178   :  { %v558_v42 = vrot.slane %v2033_v14, %v2180_v27  ;;  %v1213_v9 = vadd.f32 %v1211_v28, %v1201_v10  ;;  %v1222_v0 = vmul.f32 %v1217_v59, %v2161_v16  ;;  %v1223_v46 = vmul.f32 %v1221_v29, %v2161_v16  ;;  %v2469_v51 = vpop.permute.xlu0 %636 }
 0x179   :  { %v583_v7 = vsel %vm172_vm11, %v580_v3, %v582_v50  ;;  %v584_v61 = vsel %vm172_vm11, %v582_v50, %v580_v3  ;;  %v529_v43 = vadd.f32 %v527_v36, %v513_v1  ;;  %v530_v34 = vadd.f32 %v528_v15, %v514_v17 }
 0x17a   :  { %v1263_v60 = vpop.permute.xlu1 %1262  ;;  %v543_v56 = vmul.f32 %v538_v5, %v2364_v55  ;;  %v544_v8 = vmul.f32 %v542_v41, %v2364_v55  ;;  %v1229_v49 = vrot.slane %v2051_v26, %v2174_v23  ;;  %v1233_v57 = vrot.slane %v2063_v31, %v2174_v23 }
 0x17b   :  { %v1224_v16 = vadd.f32 %v1222_v0, %v1212_v53  ;;  %v570_v63 = vrot.slane %v2031_v13, %v2191_v33  ;;  %v1225_v62 = vadd.f32 %v1223_v46, %v1213_v9  ;;  %v574_v3 = vrot.slane %v2033_v14, %v2191_v33 }
 0x17c   :  { %v2451_v6 = vsel %vm1874_vm6, %v583_v7, 0.0  ;;  %v2455_v52 = vsel %vm1902_vm10, %v584_v61, 0.0  ;;  %v1234_v44 = vmul.f32 %v1229_v49, %v2364_v55  ;;  %v1235_v18 = vmul.f32 %v1233_v57, %v2364_v55 }
 0x17d   :  { %v559_v54 = vmul.f32 %v554_v30, %v2341_v38  ;;  %v1266_v13 = vsel %vm172_vm11, %v1263_v60, %v1265_v11  ;;  %v545_v14 = vadd.f32 %v543_v56, %v529_v43  ;;  %v546_v50 = vadd.f32 %v544_v8, %v530_v34  ;;  %v652_v34 = vpop.permute.xlu0 %651 }
 0x17e   :  { %v2431_v45 = vpop.permute.xlu1 %620  ;;  %v560_v21 = vmul.f32 %v558_v42, %v2341_v38  ;;  %v1267_v24 = vsel %vm172_vm11, %v1265_v11, %v1263_v60  ;;  %v1241_v25 = vrot.slane %v2051_v26, %v2180_v27  ;;  %v1236_v10 = vadd.f32 %v1234_v44, %v1224_v16 }
 0x17f   :  { %v594_v55 = vrot.slane %v2451_v6, %v2172_v22  ;;  %v598_v2 = vrot.slane %v2455_v52, %v2172_v22  ;;  %v1245_v5 = vrot.slane %v2063_v31, %v2180_v27  ;;  %v1237_v20 = vadd.f32 %v1235_v18, %v1225_v62 }
 0x180   :  { %v2479_v1 = vsel %vm1874_vm6, %v1266_v13, 0.0  ;;  %v1246_v60 = vmul.f32 %v1241_v25, %v2341_v38  ;;  %v575_v17 = vmul.f32 %v570_v63, %v2366_v12  ;;  %v576_v41 = vmul.f32 %v574_v3, %v2366_v12 }
 0x181   :  { %v2486_v28 = vsel %vm1902_vm10, %v1267_v24, 0.0  ;;  %v561_v59 = vadd.f32 %v559_v54, %v545_v14  ;;  %v562_v29 = vadd.f32 %v560_v21, %v546_v50  ;;  %v1247_v30 = vmul.f32 %v1245_v5, %v2341_v38  ;;  %v1319_v24 = vpop.permute.xlu0 %1318 }
 0x182   :  { %v1253_v53 = vrot.slane %v2051_v26, %v2191_v33  ;;  %v1248_v15 = vadd.f32 %v1246_v60, %v1236_v10  ;;  %v599_v42 = vmul.f32 %v594_v55, %v2390_v39  ;;  %v600_v9 = vmul.f32 %v598_v2, %v2390_v39 }
 0x183   :  { %v2462_v19 = vpop.permute.xlu1 %660  ;;  %v1273_v0 = vrot.slane %v2479_v1, %v2172_v22  ;;  %v1249_v46 = vadd.f32 %v1247_v30, %v1237_v20  ;;  %v1277_v38 = vrot.slane %v2486_v28, %v2172_v22  ;;  %v577_v26 = vadd.f32 %v575_v17, %v561_v59 }
 0x184   :  { %v1258_v11 = vmul.f32 %v1253_v53, %v2366_v12  ;;  %v578_v7 = vadd.f32 %v576_v41, %v562_v29  ;;  %v610_v61 = vrot.slane %v2451_v6, %v2174_v23  ;;  %v614_v43 = vrot.slane %v2455_v52, %v2174_v23 }
 0x185   :  { %v1259_v56 = vmul.f32 %v1257_v58, %v2366_v12  ;;  %v601_v31 = vadd.f32 %v599_v42, %v577_v26  ;;  %v1278_v16 = vmul.f32 %v1273_v0, %v2390_v39  ;;  %v1279_v62 = vmul.f32 %v1277_v38, %v2390_v39 }
 0x186   :  { %v1260_v49 = vadd.f32 %v1258_v11, %v1248_v15  ;;  %v602_v57 = vadd.f32 %v600_v9, %v578_v7  ;;  %v615_v3 = vmul.f32 %v610_v61, %v2388_v37  ;;  %v616_v44 = vmul.f32 %v614_v43, %v2388_v37  ;;  %v693_v7 = vpop.permute.xlu0 %692 }
 0x187   :  { %v1261_v63 = vadd.f32 %v1259_v56, %v1249_v46  ;;  %v1285_v18 = vrot.slane %v2479_v1, %v2174_v23  ;;  %v626_v12 = vrot.slane %v2451_v6, %v2180_v27  ;;  %v1289_v13 = vrot.slane %v2486_v28, %v2174_v23 }
 0x188   :  { %v2491_v36 = vpop.permute.xlu1 %676  ;;  %v630_v50 = vrot.slane %v2455_v52, %v2180_v27  ;;  %v1280_v21 = vadd.f32 %v1278_v16, %v1260_v49  ;;  %v617_v25 = vadd.f32 %v615_v3, %v601_v31  ;;  %v618_v10 = vadd.f32 %v616_v44, %v602_v57 }
 0x189   :  { %v1281_v55 = vadd.f32 %v1279_v62, %v1261_v63  ;;  %v1290_v60 = vmul.f32 %v1285_v18, %v2388_v37  ;;  %v1297_v17 = vrot.slane %v2479_v1, %v2180_v27  ;;  %v631_v41 = vmul.f32 %v626_v12, %v2431_v45 }
 0x18a   :  { %v1291_v29 = vmul.f32 %v1289_v13, %v2388_v37  ;;  %v1301_v30 = vrot.slane %v2486_v28, %v2180_v27  ;;  %v632_v53 = vmul.f32 %v630_v50, %v2431_v45  ;;  %v642_v9 = vrot.slane %v2451_v6, %v2191_v33  ;;  %v2585_v13 = vpop.permute.xlu0 %748 }
 0x18b   :  { %v1292_v0 = vadd.f32 %v1290_v60, %v1280_v21  ;;  %v646_v46 = vrot.slane %v2455_v52, %v2191_v33  ;;  %v1309_v38 = vrot.slane %v2479_v1, %v2191_v33  ;;  %v633_v26 = vadd.f32 %v631_v41, %v617_v25 }
 0x18c   :  { %v654_v8 = vpop.permute.xlu1 %653  ;;  %v1293_v11 = vadd.f32 %v1291_v29, %v1281_v55  ;;  %v1302_v6 = vmul.f32 %v1297_v17, %v2431_v45  ;;  %v1313_v47 = vrot.slane %v2486_v28, %v2191_v33  ;;  %v634_v43 = vadd.f32 %v632_v53, %v618_v10 }
 0x18d   :  { %v655_v54 = vsel %vm185_vm12, %v652_v34, %v654_v8  ;;  %v656_v14 = vsel %vm185_vm12, %v654_v8, %v652_v34  ;;  %v1303_v52 = vmul.f32 %v1301_v30, %v2431_v45  ;;  %v647_v56 = vmul.f32 %v642_v9, %v2469_v51 }
 0x18e   :  { %v2525_v2 = vsel %vm1845_vm0, %v655_v54, 0.0  ;;  %v2537_v59 = vsel %vm1952_vm14, %v656_v14, 0.0  ;;  %v1304_v8 = vadd.f32 %v1302_v6, %v1292_v0  ;;  %v648_v31 = vmul.f32 %v646_v46, %v2469_v51  ;;  %v1375_v46 = vpop.permute.xlu0 %1374 }
 0x18f   :  { %v666_v58 = vrot.slane %v2525_v2, %v2172_v22  ;;  %v670_v40 = vrot.slane %v2537_v59, %v2172_v22  ;;  %v1305_v57 = vadd.f32 %v1303_v52, %v1293_v11  ;;  %v1314_v28 = vmul.f32 %v1309_v38, %v2469_v51 }
 0x190   :  { %v1321_v39 = vpop.permute.xlu1 %1320  ;;  %v649_v63 = vadd.f32 %v647_v56, %v633_v26  ;;  %v682_v45 = vrot.slane %v2525_v2, %v2174_v23  ;;  %v1315_v3 = vmul.f32 %v1313_v47, %v2469_v51  ;;  %v650_v44 = vadd.f32 %v648_v31, %v634_v43 }
 0x191   :  { %v1322_v5 = vsel %vm185_vm12, %v1319_v24, %v1321_v39  ;;  %v1323_v20 = vsel %vm185_vm12, %v1321_v39, %v1319_v24  ;;  %v671_v1 = vmul.f32 %v666_v58, %v2462_v19  ;;  %v672_v16 = vmul.f32 %v670_v40, %v2462_v19 }
 0x192   :  { %v2545_v15 = vsel %vm1845_vm0, %v1322_v5, 0.0  ;;  %v2555_v37 = vsel %vm1952_vm14, %v1323_v20, 0.0  ;;  %v686_v18 = vrot.slane %v2537_v59, %v2174_v23  ;;  %v1316_v12 = vadd.f32 %v1314_v28, %v1304_v8 }
 0x193   :  { %v1329_v61 = vrot.slane %v2545_v15, %v2172_v22  ;;  %v1333_v34 = vrot.slane %v2555_v37, %v2172_v22  ;;  %v673_v14 = vadd.f32 %v671_v1, %v649_v63  ;;  %v1341_v39 = vrot.slane %v2545_v15, %v2174_v23 }
 0x194   :  { %v2547_v42 = vpop.permute.xlu1 %708  ;;  %v1317_v21 = vadd.f32 %v1315_v3, %v1305_v57  ;;  %v674_v24 = vadd.f32 %v672_v16, %v650_v44  ;;  %v1345_v25 = vrot.slane %v2555_v37, %v2174_v23  ;;  %v687_v51 = vmul.f32 %v682_v45, %v2491_v36  ;;  %v765_v3 = vpop.permute.xlu0 %764 }
 0x195   :  { %v1334_v62 = vmul.f32 %v1329_v61, %v2462_v19  ;;  %v1335_v54 = vmul.f32 %v1333_v34, %v2462_v19  ;;  %v698_v10 = vrot.slane %v2525_v2, %v2180_v27  ;;  %v688_v19 = vmul.f32 %v686_v18, %v2491_v36 }
 0x196   :  { %v702_v5 = vrot.slane %v2537_v59, %v2180_v27  ;;  %v714_v20 = vrot.slane %v2525_v2, %v2191_v33  ;;  %v689_v17 = vadd.f32 %v687_v51, %v673_v14  ;;  %v1346_v41 = vmul.f32 %v1341_v39, %v2491_v36 }
 0x197   :  { %v1336_v55 = vadd.f32 %v1334_v62, %v1316_v12  ;;  %v1337_v60 = vadd.f32 %v1335_v54, %v1317_v21  ;;  %v1353_v29 = vrot.slane %v2545_v15, %v2180_v27  ;;  %v1357_v30 = vrot.slane %v2555_v37, %v2180_v27 }
 0x198   :  { %v690_v9 = vadd.f32 %v688_v19, %v674_v24  ;;  %v1347_v0 = vmul.f32 %v1345_v25, %v2491_v36  ;;  %v703_v11 = vmul.f32 %v698_v10, %v693_v7  ;;  %v704_v6 = vmul.f32 %v702_v5, %v693_v7 }
 0x199   :  { %v2573_v49 = vpop.permute.xlu1 %732  ;;  %v1348_v40 = vadd.f32 %v1346_v41, %v1336_v55  ;;  %v718_v36 = vrot.slane %v2537_v59, %v2191_v33  ;;  %v1358_v43 = vmul.f32 %v1353_v29, %v693_v7  ;;  %v1359_v52 = vmul.f32 %v1357_v30, %v693_v7 }
 0x19a   :  { %v1349_v61 = vadd.f32 %v1347_v0, %v1337_v60  ;;  %v1365_v34 = vrot.slane %v2545_v15, %v2191_v33  ;;  %v705_v56 = vadd.f32 %v703_v11, %v689_v17  ;;  %v1369_v1 = vrot.slane %v2555_v37, %v2191_v33 }
 0x19b   :  { %v706_v31 = vadd.f32 %v704_v6, %v690_v9  ;;  %v719_v57 = vmul.f32 %v714_v20, %v2547_v42  ;;  %v1360_v16 = vadd.f32 %v1358_v43, %v1348_v40  ;;  %v720_v15 = vmul.f32 %v718_v36, %v2547_v42 }
 0x19c   :  { %v1361_v45 = vadd.f32 %v1359_v52, %v1349_v61  ;;  %v1370_v18 = vmul.f32 %v1365_v34, %v2547_v42 }
 0x19d   :  { %v724_v50 = vpop.permute.xlu1 %723  ;;  %v721_v44 = vadd.f32 %v719_v57, %v705_v56  ;;  %v722_v39 = vadd.f32 %v720_v15, %v706_v31 }
 0x19e   :  { %v1372_v35 = vadd.f32 %v1370_v18, %v1360_v16 }
 0x1a1   :  { %v726_v53 = vpop.permute.xlu1 %725 }
 0x1a2   :  { %v2607_v58 = vsel %vm198_vm15, %v724_v50, %v726_v53  ;;  %v728_v2 = vsel %vm198_vm15, %v726_v53, %v724_v50  ;;  %v1371_v50 = vmul.f32 %v1369_v1, %v2547_v42 }
 0x1a3   :  { %v2613_v38 = vsel %vm63_vm13, %v728_v2, 0.0  ;;  %v738_v26 = vrot.slane %v2607_v58, %v2172_v22  ;;  %v754_v54 = vrot.slane %v2607_v58, %v2174_v23  ;;  %v770_v42 = vrot.slane %v2607_v58, %v2180_v27 }
 0x1a4   :  { %v742_v47 = vrot.slane %v2613_v38, %v2172_v22  ;;  %v758_v21 = vrot.slane %v2613_v38, %v2174_v23  ;;  %v1373_v10 = vadd.f32 %v1371_v50, %v1361_v45  ;;  %v774_v17 = vrot.slane %v2613_v38, %v2180_v27 }
 0x1a5   :  { %v1377_v8 = vpop.permute.xlu1 %1376  ;;  %v743_v28 = vmul.f32 %v738_v26, %v2573_v49  ;;  %v759_v20 = vmul.f32 %v754_v54, %v2585_v13  ;;  %v775_v40 = vmul.f32 %v770_v42, %v765_v3  ;;  %v786_v26 = vrot.slane %v2607_v58, %v2191_v33 }
 0x1a6   :  { %v1378_v59 = vsel %vm198_vm15, %v1375_v46, %v1377_v8  ;;  %v1379_v7 = vsel %vm198_vm15, %v1377_v8, %v1375_v46  ;;  %v744_v62 = vmul.f32 %v742_v47, %v2573_v49  ;;  %v760_v60 = vmul.f32 %v758_v21, %v2585_v13 }
 0x1a7   :  { %v1385_v63 = vrot.slane %v1378_v59, %v2172_v22  ;;  %v1381_v37 = vsel %vm63_vm13, %v1379_v7, 0.0  ;;  %v745_v25 = vadd.f32 %v743_v28, %v721_v44  ;;  %v1397_v19 = vrot.slane %v1378_v59, %v2174_v23 }
 0x1a8   :  { %v1389_v12 = vrot.slane %v1381_v37, %v2172_v22  ;;  %v746_v55 = vadd.f32 %v744_v62, %v722_v39  ;;  %v1401_v5 = vrot.slane %v1381_v37, %v2174_v23  ;;  %v1409_v9 = vrot.slane %v1378_v59, %v2180_v27 }
 0x1a9   :  { %v781_v14 = vpop.permute.xlu1 %780  ;;  %v1390_v24 = vmul.f32 %v1385_v63, %v2573_v49  ;;  %v761_v53 = vadd.f32 %v759_v20, %v745_v25  ;;  %v1402_v2 = vmul.f32 %v1397_v19, %v2585_v13  ;;  %v1413_v11 = vrot.slane %v1381_v37, %v2180_v27 }
 0x1aa   :  { %v1391_v51 = vmul.f32 %v1389_v12, %v2573_v49  ;;  %v2655_v49 = vpop.permute.xlu0 %820  ;;  %v762_v0 = vadd.f32 %v760_v60, %v746_v55  ;;  %v1403_v46 = vmul.f32 %v1401_v5, %v2585_v13  ;;  %v776_v6 = vmul.f32 %v774_v17, %v765_v3 }
 0x1ab   :  { %v1392_v41 = vadd.f32 %v1390_v24, %v1372_v35  ;;  %v790_v43 = vrot.slane %v2613_v38, %v2191_v33  ;;  %v1421_v52 = vrot.slane %v1378_v59, %v2191_v33  ;;  %v777_v34 = vadd.f32 %v775_v40, %v761_v53 }
 0x1ac   :  { %v1393_v29 = vadd.f32 %v1391_v51, %v1373_v10  ;;  %v791_v56 = vmul.f32 %v786_v26, %v781_v14  ;;  %v1414_v8 = vmul.f32 %v1409_v9, %v765_v3  ;;  %v1415_v1 = vmul.f32 %v1413_v11, %v765_v3 }
 0x1ad   :  { %v1404_v36 = vadd.f32 %v1402_v2, %v1392_v41  ;;  %v1425_v13 = vrot.slane %v1381_v37, %v2191_v33  ;;  %v778_v31 = vadd.f32 %v776_v6, %v762_v0  ;;  %v792_v16 = vmul.f32 %v790_v43, %v781_v14 }
 0x1ae   :  { %v2653_v30 = vpop.permute.xlu1 %804  ;;  %v1405_v61 = vadd.f32 %v1403_v46, %v1393_v29  ;;  %v1431_v57 = vpop.permute.xlu0 %1430  ;;  %v793_v63 = vadd.f32 %v791_v56, %v777_v34  ;;  %v1426_v15 = vmul.f32 %v1421_v52, %v781_v14 }
 0x1af   :  { %v1416_v28 = vadd.f32 %v1414_v8, %v1404_v36  ;;  %v794_v59 = vadd.f32 %v792_v16, %v778_v31  ;;  %v1427_v62 = vmul.f32 %v1425_v13, %v781_v14 }
 0x1b0   :  { %v1417_v58 = vadd.f32 %v1415_v1, %v1405_v61 }
 0x1b1   :  { %v1428_v50 = vadd.f32 %v1426_v15, %v1416_v28 }
 0x1b2   :  { %v796_v47 = vpop.permute.xlu1 %795  ;;  %v837_v39 = vpop.permute.xlu0 %836  ;;  %v1429_v21 = vadd.f32 %v1427_v62, %v1417_v58 }
 0x1b6   :  { %v798_v7 = vpop.permute.xlu1 %797 }
 0x1b7   :  { %v799_v45 = vsel %vm211_vm8, %v796_v47, %v798_v7  ;;  %v800_v38 = vsel %vm211_vm8, %v798_v7, %v796_v47 }
 0x1b8   :  { %v801_v3 = vsel %vm1874_vm6, %v799_v45, 0.0  ;;  %v802_v37 = vsel %vm2009_vm7, %v800_v38, 0.0 }
 0x1b9   :  { %v810_v44 = vrot.slane %v801_v3, %v2172_v22  ;;  %v814_v18 = vrot.slane %v802_v37, %v2172_v22  ;;  %v826_v54 = vrot.slane %v801_v3, %v2174_v23  ;;  %v830_v12 = vrot.slane %v802_v37, %v2174_v23 }
 0x1ba   :  { %v1433_v24 = vpop.permute.xlu1 %1432  ;;  %v842_v14 = vrot.slane %v801_v3, %v2180_v27  ;;  %v846_v35 = vrot.slane %v802_v37, %v2180_v27  ;;  %v858_v6 = vrot.slane %v801_v3, %v2191_v33  ;;  %v862_v36 = vrot.slane %v802_v37, %v2191_v33 }
 0x1bb   :  { %v815_v25 = vmul.f32 %v810_v44, %v2653_v30  ;;  %v816_v51 = vmul.f32 %v814_v18, %v2653_v30  ;;  %v831_v10 = vmul.f32 %v826_v54, %v2655_v49  ;;  %v832_v55 = vmul.f32 %v830_v12, %v2655_v49 }
 0x1bc   :  { %v1434_v19 = vsel %vm211_vm8, %v1431_v57, %v1433_v24  ;;  %v1435_v5 = vsel %vm211_vm8, %v1433_v24, %v1431_v57  ;;  %v847_v20 = vmul.f32 %v842_v14, %v837_v39  ;;  %v848_v42 = vmul.f32 %v846_v35, %v837_v39 }
 0x1bd   :  { %v1436_v60 = vsel %vm1874_vm6, %v1434_v19, 0.0  ;;  %v1437_v17 = vsel %vm2009_vm7, %v1435_v5, 0.0  ;;  %v817_v41 = vadd.f32 %v815_v25, %v793_v63  ;;  %v818_v29 = vadd.f32 %v816_v51, %v794_v59 }
 0x1be   :  { %v1441_v53 = vrot.slane %v1436_v60, %v2172_v22  ;;  %v1445_v9 = vrot.slane %v1437_v17, %v2172_v22  ;;  %v1453_v0 = vrot.slane %v1436_v60, %v2174_v23  ;;  %v1457_v2 = vrot.slane %v1437_v17, %v2174_v23  ;;  %v853_v40 = vpop.permute.xlu1 %852 }
 0x1bf   :  { %v833_v32 = vadd.f32 %v831_v10, %v817_v41  ;;  %v834_v46 = vadd.f32 %v832_v55, %v818_v29  ;;  %v1465_v11 = vrot.slane %v1436_v60, %v2180_v27  ;;  %v1469_v48 = vrot.slane %v1437_v17, %v2180_v27  ;;  %v1623_v55 = vld [vmem:[#allocation2] sm:$0xff] }
 0x1c0   :  { %v1446_v4 = vmul.f32 %v1441_v53, %v2653_v30  ;;  %v1447_v26 = vmul.f32 %v1445_v9, %v2653_v30  ;;  %v1458_v22 = vmul.f32 %v1453_v0, %v2655_v49  ;;  %v1459_v61 = vmul.f32 %v1457_v2, %v2655_v49 }
 0x1c1   :  { %v849_v23 = vadd.f32 %v847_v20, %v833_v32  ;;  %v850_v47 = vadd.f32 %v848_v42, %v834_v46  ;;  %v863_v34 = vmul.f32 %v858_v6, %v853_v40  ;;  %v864_v56 = vmul.f32 %v862_v36, %v853_v40  ;;  %v1624_v42 = vld [vmem:[#allocation2 + $0x8] sm:$0xff] }
 0x1c2   :  { %v1448_v43 = vadd.f32 %v1446_v4, %v1428_v50  ;;  %v1449_v52 = vadd.f32 %v1447_v26, %v1429_v21  ;;  %v1470_v27 = vmul.f32 %v1465_v11, %v837_v39  ;;  %v1471_v8 = vmul.f32 %v1469_v48, %v837_v39 }
 0x1c3   :  { %v1477_v1 = vrot.slane %v1436_v60, %v2191_v33  ;;  %v1481_v30 = vrot.slane %v1437_v17, %v2191_v33  ;;  %v865_v57 = vadd.f32 %v863_v34, %v849_v23  ;;  %v866_v16 = vadd.f32 %v864_v56, %v850_v47 }
 0x1c4   :  { %v1460_v13 = vadd.f32 %v1458_v22, %v1448_v43  ;;  %v1461_v31 = vadd.f32 %v1459_v61, %v1449_v52 }
 0x1c5   :  { %v1482_v28 = vmul.f32 %v1477_v1, %v853_v40  ;;  %v1483_v58 = vmul.f32 %v1481_v30, %v853_v40  ;;  %v867_v63 = vsub.f32 0.0, %v865_v57  ;;  %v868_v15 = vsub.f32 0.0, %v866_v16 }
 0x1c6   :  { %v1472_v7 = vadd.f32 %v1470_v27, %v1460_v13  ;;  %v1473_v49 = vadd.f32 %v1471_v8, %v1461_v31 }
 0x1c7   :  { %v869_v45 = vmul.f32 1.442695, %v867_v63  ;;  %v871_v38 = vmul.f32 1.442695, %v868_v15 }
 0x1c8   :  { %v1484_v59 = vadd.f32 %v1482_v28, %v1472_v7  ;;  %v1485_v62 = vadd.f32 %v1483_v58, %v1473_v49 }
 0x1c9   :  { %1607 = vpow2.f32 %v869_v45 }
 0x1ca   :  { %v1486_v3 = vsub.f32 0.0, %v1484_v59  ;;  %v1487_v37 = vsub.f32 0.0, %v1485_v62  ;;  %1609 = vpow2.f32 %v871_v38 }
 0x1cc   :  { %v1488_v44 = vmul.f32 1.442695, %v1486_v3  ;;  %v1490_v33 = vmul.f32 1.442695, %v1487_v37 }
 0x1ce   :  { %1611 = vpow2.f32 %v1488_v44 }
 0x1cf   :  { %1613 = vpow2.f32 %v1490_v33 }
 0x1d3   :  { %v1608_v18 = vpop.eup %1607 }
 0x1d4   :  { %v1610_v54 = vpop.eup %1609  ;;  %v873_v12 = vadd.f32 1.0, %v1608_v18 }
 0x1d5   :  { %v874_v39 = vadd.f32 1.0, %v1610_v54 }
 0x1d6   :  { %1615 = vrcp.f32 %v873_v12 }
 0x1d7   :  { %1617 = vrcp.f32 %v874_v39 }
 0x1d8   :  { %v1612_v50 = vpop.eup %1611 }
 0x1d9   :  { %v1614_v21 = vpop.eup %1613  ;;  %v1492_v24 = vadd.f32 1.0, %v1612_v50 }
 0x1da   :  { %v1493_v14 = vadd.f32 1.0, %v1614_v21 }
 0x1db   :  { %1619 = vrcp.f32 %v1492_v24 }
 0x1dc   :  { %1621 = vrcp.f32 %v1493_v14 }
 0x1e0   :  { %v1616_v35 = vpop.eup %1615 }
 0x1e1   :  { %v1618_v25 = vpop.eup %1617 }
 0x1e2   :  { %v879_v51 = vcombine.low %v1616_v35, %v1618_v25 }
 0x1e4   :  { %v881_v19 = vmul.f32 %v1623_v55, %v879_v51 }
 0x1e5   :  { %v1620_v10 = vpop.eup %1619 }
 0x1e6   :  { %v1622_v5 = vpop.eup %1621  ;;  %882 = vst [vmem:[#allocation5] sm:$0xff] %v881_v19 }
 0x1e7   :  { %v1498_v20 = vcombine.low %v1620_v10, %v1622_v5 }
 0x1e9   :  { %v1500_v60 = vmul.f32 %v1624_v42, %v1498_v20 }
 0x1eb   :  { %1502 = vst [vmem:[#allocation5 + $0x8] sm:$0xff] %v1500_v60 }
 0x1ec   :  { %1658 = shalt.err (!%p1655_p12)
}
 0x1ed   :  { %s1659_s13 = scalar_lea.hbm %s2725_s3, 256 }
 0x1ee   :  { %p1660_p13 = scmp.ne.s32.totalorder %s2725_s3, %s1659_s13  ;;  %p1663_p0 = scmp.lt.u32.totalorder %s1659_s13, %s2725_s3 }
 0x1f0   :  { %p1665_p1 = pnand %p1663_p0, %p1660_p13 }
 0x1f2   :  { %1668 = shalt.err (!%p1665_p1)
}
 0x1f3   :  { %1514 = dma.vmem_to_hbm [thread:$0]  %s1509_s2, 256, %s2725_s3, [#allocation4], %s1674_s22, %s1674_s22, %s1675_s23  }
 0x1f4   :  { %1671 = dma.done.wait [#allocation4], 256  }
 0x1f5   :  { %1672 = vsyncadd [#allocation4], 4294967040 }
 0x1f6   :  { %1518 = vsyncpa [#allocation3], 1 }
 0x1f7   :  { %1519 = vsyncpa [#allocation4], 1 }

</bundles_post_ra>
